<compile_context>
chip_gen: v7x
topology: tpu7x:2x2x1
jax: 0.10.0
libtpu: 0.0.40
codegen_flags: <defaults>
</compile_context>

<pallas_src>
import functools

import numpy as np

import jax
import jax.numpy as jnp
from jax.experimental import pallas as pl
from jax.experimental.pallas import tpu as pltpu

EPS = 1e-5


# ---------------------------------------------------------------------------
# Fused ODEfunc kernel. One grid step per batch tile (B_TILE images).
# ---------------------------------------------------------------------------
def _odefunc_kernel(x_ref, masks_ref,
                    g1w_ref, g1b_ref, w1_ref, bmap1_ref,
                    g2w_ref, g2b_ref, w2_ref, bmap2_ref,
                    g3w_ref, g3b_ref,
                    o_ref,
                    pad_ref, patch_ref,
                    *, groups, H, W, b_tile, cin_pad, margin):
    # x_ref:   (b_tile, C, HW)           lane-dense activations (NCHW flattened)
    # masks_ref: (16, HW)                rows 0..8 = border masks per conv tap
    # g*_ref:  (C, 1)                    GroupNorm gamma / beta
    # w*_ref:  (C, 9*cin_pad)            im2col conv weights (zero-padded rows)
    # bmap*_ref: (C, HW)                 conv bias + t-channel contribution map
    # pad_ref: (b_tile*cin_pad, margin+HW+margin)   padded flat images
    # patch_ref: (9*cin_pad, b_tile*HW)  im2col patches
    C = x_ref.shape[1]
    HW = H * W
    cg = C // groups
    inv_cnt = 1.0 / float(cg * HW)
    zero_rows = cin_pad - C

    # ---- two-pass GroupNorm (+ optional fused ReLU) --------------------------
    def group_sum(s):                                   # (C,1) -> per-group sum
        return jnp.broadcast_to(
            jnp.sum(s.reshape(groups, cg), axis=1, keepdims=True),
            (groups, cg)).reshape(C, 1)

    def group_norm(a, gw_ref, gb_ref, relu):
        s1 = jnp.sum(a, axis=1, keepdims=True)          # (C, 1)
        if cg > 1:
            s1 = group_sum(s1)
        mean = s1 * inv_cnt
        d = a - mean
        s2 = jnp.sum(d * d, axis=1, keepdims=True)      # centred -> no cancellation
        if cg > 1:
            s2 = group_sum(s2)
        scale = jax.lax.rsqrt(s2 * inv_cnt + EPS) * gw_ref[...]
        y = d * scale + gb_ref[...]
        if relu:
            y = jnp.maximum(y, 0.0)
        return y

    # ---- zero the halo margins (cheap: 4 aligned vreg stores per step) -------
    zmargin = jnp.zeros((b_tile * cin_pad, margin), jnp.float32)
    pad_ref[:, 0:margin] = zmargin
    pad_ref[:, margin + HW:margin + HW + margin] = zmargin

    # ---- write one image into its padded slot (full 8-row aligned store) -----
    def write_pad(b, a):                                # a: (C, HW)
        if zero_rows:
            a = jnp.concatenate(
                [a, jnp.zeros((zero_rows, HW), jnp.float32)], axis=0)
        pad_ref[b * cin_pad:(b + 1) * cin_pad, margin:margin + HW] = a

    # ---- 3x3 conv as one wide im2col matmul over the whole batch tile --------
    def conv3x3(w_ref):
        for b in range(b_tile):
            base = b * cin_pad
            for k in range(9):
                dy, dx = divmod(k, 3)
                off = (dy - 1) * W + (dx - 1)
                sl = pad_ref[base:base + cin_pad,
                             margin + off:margin + off + HW]   # (cin_pad, HW)
                if k != 4:                       # center tap needs no border mask
                    sl = sl * masks_ref[k:k + 1, :]
                patch_ref[k * cin_pad:(k + 1) * cin_pad,
                          b * HW:(b + 1) * HW] = sl
        return jnp.dot(w_ref[...], patch_ref[...],
                       preferred_element_type=jnp.float32)      # (C, b_tile*HW)

    # ---- stage 1: GN1 + ReLU, staged into the padded buffer ------------------
    for b in range(b_tile):
        a = x_ref[b].astype(jnp.float32)                        # (C, HW)
        write_pad(b, group_norm(a, g1w_ref, g1b_ref, relu=True))

    # ---- conv1 (+ t-bias map) -> GN2 + ReLU -----------------------------------
    y1 = conv3x3(w1_ref)
    for b in range(b_tile):
        a = y1[:, b * HW:(b + 1) * HW] + bmap1_ref[...]
        write_pad(b, group_norm(a, g2w_ref, g2b_ref, relu=True))

    # ---- conv2 (+ t-bias map) -> GN3 -> store ---------------------------------
    y2 = conv3x3(w2_ref)
    for b in range(b_tile):
        a = y2[:, b * HW:(b + 1) * HW] + bmap2_ref[...]
        o_ref[b] = group_norm(a, g3w_ref, g3b_ref, relu=False).astype(o_ref.dtype)


# ---------------------------------------------------------------------------
# Wrapper: norm1 -> relu -> conv1(t,.) -> norm2 -> relu -> conv2(t,.) -> norm3
# ---------------------------------------------------------------------------
def odefunc_forward(t, x_nchw, params):
    # x_nchw: (N, C, H, W) like PyTorch. NCHW row-major == (C, H*W) lane-dense,
    # so the boundary reshapes are free metadata ops (no transposes).
    N, C, H, W = x_nchw.shape
    HW = H * W
    groups = min(32, C)
    assert C % groups == 0
    cin_pad = ((C + 7) // 8) * 8          # x-channel rows per tap, sublane-aligned
    margin = 128                          # lane-aligned halo on each side
    t_f32 = jnp.asarray(t, jnp.float32)

    # Batch tile: widest divisor of N keeping the conv RHS lane width <= 2048.
    b_tile = 1
    for b in range(1, N + 1):
        if N % b == 0 and b * HW <= 2048:
            b_tile = b

    x_flat = x_nchw.reshape(N, C, HW)

    # ---- precomputed 3x3 border masks (constant input, rows padded to 16) ----
    col = np.arange(HW)
    xc, yc = col % W, col // W

    def tap_mask(dy, dx):
        m = np.ones((HW,), np.float32)
        if dy == 0:
            m *= (yc >= 1)
        if dy == 2:
            m *= (yc <= H - 2)
        if dx == 0:
            m *= (xc >= 1)
        if dx == 2:
            m *= (xc <= W - 2)
        return m

    masks9 = jnp.asarray(
        np.stack([tap_mask(dy, dx) for dy in range(3) for dx in range(3)])
        .astype(np.float32))                                    # (9, HW)
    masks16 = jnp.concatenate(
        [masks9, jnp.ones((16 - 9, HW), jnp.float32)], axis=0)  # (16, HW)

    # ---- conv weights: im2col matrix (x channels only) + t-channel bias map --
    def conv_mats(w, b):
        # w: (3, 3, C+1, Cout), input channel 0 = t channel; b: (Cout,)
        w = w.astype(jnp.float32)
        w_x = w[:, :, 1:, :]                                    # (3,3,C,Cout)
        if cin_pad > C:
            w_x = jnp.pad(w_x, ((0, 0), (0, 0), (0, cin_pad - C), (0, 0)))
        w_mat = jnp.transpose(w_x.reshape(9 * cin_pad, C))      # (Cout, 9*cin_pad)
        # t channel is a constant image -> fold its (zero-padded) conv into a
        # per-pixel bias map: t * sum_k w_t[k] * mask_k[p], plus the conv bias.
        w_t = jnp.transpose(w[:, :, 0, :].reshape(9, C))        # (Cout, 9)
        bmap = t_f32 * (w_t @ masks9) + b.astype(jnp.float32)[:, None]   # (Cout, HW)
        return w_mat, bmap

    w1_mat, bmap1 = conv_mats(params["conv1_w"], params["conv1_b"])
    w2_mat, bmap2 = conv_mats(params["conv2_w"], params["conv2_b"])

    def colv(v):
        return v.astype(jnp.float32).reshape(C, 1)

    img_spec = pl.BlockSpec((b_tile, C, HW), lambda n: (n, 0, 0))
    mask_spec = pl.BlockSpec((16, HW), lambda n: (0, 0))
    vec_spec = pl.BlockSpec((C, 1), lambda n: (0, 0))
    w_spec = pl.BlockSpec((C, 9 * cin_pad), lambda n: (0, 0))
    bmap_spec = pl.BlockSpec((C, HW), lambda n: (0, 0))

    kernel = functools.partial(
        _odefunc_kernel, groups=groups, H=H, W=W,
        b_tile=b_tile, cin_pad=cin_pad, margin=margin)

    out = pl.pallas_call(
        kernel,
        out_shape=jax.ShapeDtypeStruct((N, C, HW), x_nchw.dtype),
        grid=(N // b_tile,),
        in_specs=[
            img_spec, mask_spec,
            vec_spec, vec_spec, w_spec, bmap_spec,     # gn1, conv1
            vec_spec, vec_spec, w_spec, bmap_spec,     # gn2, conv2
            vec_spec, vec_spec,                        # gn3
        ],
        out_specs=img_spec,
        scratch_shapes=(
            pltpu.VMEM((b_tile * cin_pad, margin + HW + margin), jnp.float32),
            pltpu.VMEM((9 * cin_pad, b_tile * HW), jnp.float32),
        ),
        compiler_params=pltpu.CompilerParams(
            dimension_semantics=("parallel",),
            vmem_limit_bytes=32 * 1024 * 1024),
    )(
        x_flat, masks16,
        colv(params["gn1_w"]), colv(params["gn1_b"]), w1_mat, bmap1,
        colv(params["gn2_w"]), colv(params["gn2_b"]), w2_mat, bmap2,
        colv(params["gn3_w"]), colv(params["gn3_b"]),
    )
    return out.reshape(N, C, H, W)


# ---------------------------------------------------------------------------
# Pure-JAX reference (for correctness check only)
# ---------------------------------------------------------------------------
def ref_forward(t, x_nchw, params):
    g = min(32, x_nchw.shape[1])

    def gn(x, w, b):
        N, C, H, W = x.shape
        xg = x.reshape(N, g, (C // g) * H * W)
        m = xg.mean(-1, keepdims=True)
        v = ((xg - m) ** 2).mean(-1, keepdims=True)
        xn = ((xg - m) / jnp.sqrt(v + EPS)).reshape(N, C, H, W)
        return xn * w[None, :, None, None] + b[None, :, None, None]

    def conv(x, w, b):
        w_oihw = jnp.transpose(w, (3, 2, 0, 1))   # (3,3,Cin,Cout) -> OIHW
        y = jax.lax.conv_general_dilated(
            x, w_oihw, window_strides=(1, 1), padding=((1, 1), (1, 1)),
            dimension_numbers=("NCHW", "OIHW", "NCHW"),
            precision=jax.lax.Precision.HIGHEST)
        return y + b[None, :, None, None]

    out = jnp.maximum(gn(x_nchw, params["gn1_w"], params["gn1_b"]), 0.0)
    tt = jnp.full_like(out[:, :1], t)
    out = conv(jnp.concatenate([tt, out], 1), params["conv1_w"], params["conv1_b"])
    out = jnp.maximum(gn(out, params["gn2_w"], params["gn2_b"]), 0.0)
    tt = jnp.full_like(out[:, :1], t)
    out = conv(jnp.concatenate([tt, out], 1), params["conv2_w"], params["conv2_b"])
    return gn(out, params["gn3_w"], params["gn3_b"])


if __name__ == "__main__":
    key = jax.random.PRNGKey(0)
    N, C, H, W = 2, 4, 16, 16       # dim = 4 -> GroupNorm(min(32,4)=4, 4)
    Cin1 = C + 1                    # ConcatConv2d input channels (t channel first)

    k_x, k_w1, k_b1, k_w2, k_b2 = jax.random.split(key, 5)
    x = jax.random.normal(k_x, (N, C, H, W), jnp.float32)
    t = jnp.float32(0.5)

    params = {
        # GroupNorm affine params (PyTorch default init: weight=1, bias=0)
        "gn1_w": jnp.ones((C,), jnp.float32),
        "gn1_b": jnp.zeros((C,), jnp.float32),
        "gn2_w": jnp.ones((C,), jnp.float32),
        "gn2_b": jnp.zeros((C,), jnp.float32),
        "gn3_w": jnp.ones((C,), jnp.float32),
        "gn3_b": jnp.zeros((C,), jnp.float32),
        # Conv weights in (kh, kw, Cin+1, Cout) layout, deterministic init
        "conv1_w": jax.random.normal(k_w1, (3, 3, Cin1, C), jnp.float32) * 0.1,
        "conv1_b": jax.random.normal(k_b1, (C,), jnp.float32) * 0.1,
        "conv2_w": jax.random.normal(k_w2, (3, 3, Cin1, C), jnp.float32) * 0.1,
        "conv2_b": jax.random.normal(k_b2, (C,), jnp.float32) * 0.1,
    }

    out = jax.block_until_ready(odefunc_forward(t, x, params))
    ref = jax.block_until_ready(ref_forward(t, x, params))

    assert out.shape == (N, C, H, W)
    err = float(jnp.max(jnp.abs(out - ref)))
    assert jnp.allclose(out, ref, atol=2e-4, rtol=2e-4), err

    print("KERNEL_OK")
</pallas_src>

<mosaic_0001>
module attributes {stable_mosaic.version = 11 : i64} {
  func.func @_odefunc_kernel(%arg0: i32, %arg1: memref<2x4x256xf32, #tpu.memory_space<vmem>>, %arg2: memref<16x256xf32, #tpu.memory_space<vmem>>, %arg3: memref<4x1xf32, #tpu.memory_space<vmem>>, %arg4: memref<4x1xf32, #tpu.memory_space<vmem>>, %arg5: memref<4x72xf32, #tpu.memory_space<vmem>>, %arg6: memref<4x256xf32, #tpu.memory_space<vmem>>, %arg7: memref<4x1xf32, #tpu.memory_space<vmem>>, %arg8: memref<4x1xf32, #tpu.memory_space<vmem>>, %arg9: memref<4x72xf32, #tpu.memory_space<vmem>>, %arg10: memref<4x256xf32, #tpu.memory_space<vmem>>, %arg11: memref<4x1xf32, #tpu.memory_space<vmem>>, %arg12: memref<4x1xf32, #tpu.memory_space<vmem>>, %arg13: memref<2x4x256xf32, #tpu.memory_space<vmem>>, %arg14: memref<16x512xf32, #tpu.memory_space<vmem>>, %arg15: memref<72x512xf32, #tpu.memory_space<vmem>>) attributes {dimension_semantics = [#tpu.dimension_semantics<parallel>], iteration_bounds = array<i64: 1>, scalar_prefetch = 0 : i64, scratch_operands = 2 : i64, tpu.core_type = #tpu.core_type<tc>, window_params = [{transform_indices = @transform_0, window_bounds = array<i64: 2, 4, 256>}, {pipeline_mode = #tpu.pipeline_mode<synchronous>, transform_indices = @transform_1, window_bounds = array<i64: 16, 256>}, {pipeline_mode = #tpu.pipeline_mode<synchronous>, transform_indices = @transform_2, window_bounds = array<i64: 4, 1>}, {pipeline_mode = #tpu.pipeline_mode<synchronous>, transform_indices = @transform_3, window_bounds = array<i64: 4, 1>}, {pipeline_mode = #tpu.pipeline_mode<synchronous>, transform_indices = @transform_4, window_bounds = array<i64: 4, 72>}, {pipeline_mode = #tpu.pipeline_mode<synchronous>, transform_indices = @transform_5, window_bounds = array<i64: 4, 256>}, {pipeline_mode = #tpu.pipeline_mode<synchronous>, transform_indices = @transform_6, window_bounds = array<i64: 4, 1>}, {pipeline_mode = #tpu.pipeline_mode<synchronous>, transform_indices = @transform_7, window_bounds = array<i64: 4, 1>}, {pipeline_mode = #tpu.pipeline_mode<synchronous>, transform_indices = @transform_8, window_bounds = array<i64: 4, 72>}, {pipeline_mode = #tpu.pipeline_mode<synchronous>, transform_indices = @transform_9, window_bounds = array<i64: 4, 256>}, {pipeline_mode = #tpu.pipeline_mode<synchronous>, transform_indices = @transform_10, window_bounds = array<i64: 4, 1>}, {pipeline_mode = #tpu.pipeline_mode<synchronous>, transform_indices = @transform_11, window_bounds = array<i64: 4, 1>}, {transform_indices = @transform_12, window_bounds = array<i64: 2, 4, 256>}]} {
    %cst = arith.constant 0.000000e+00 : f32
    %0 = vector.broadcast %cst : f32 to vector<16x128xf32>
    %c0 = arith.constant 0 : index
    %c0_0 = arith.constant 0 : index
    %1 = vector.load %arg14[%c0, %c0_0] : memref<16x512xf32, #tpu.memory_space<vmem>>, vector<16x128xf32>
    tpu.vector_store %arg14[%c0, %c0_0], %0 {strides = array<i32>} : memref<16x512xf32, #tpu.memory_space<vmem>>, vector<16x128xf32>,
    %c0_1 = arith.constant 0 : index
    %c384 = arith.constant 384 : index
    %2 = vector.load %arg14[%c0_1, %c384] : memref<16x512xf32, #tpu.memory_space<vmem>>, vector<16x128xf32>
    tpu.vector_store %arg14[%c0_1, %c384], %0 {strides = array<i32>} : memref<16x512xf32, #tpu.memory_space<vmem>>, vector<16x128xf32>,
    %c0_2 = arith.constant 0 : index
    %c0_3 = arith.constant 0 : index
    %c0_4 = arith.constant 0 : index
    %3 = vector.load %arg1[%c0_2, %c0_3, %c0_4] : memref<2x4x256xf32, #tpu.memory_space<vmem>>, vector<1x4x256xf32>
    %4 = vector.shape_cast %3 : vector<1x4x256xf32> to vector<4x256xf32>
    %cst_5 = arith.constant dense<0.000000e+00> : vector<4xf32>
    %5 = vector.multi_reduction <add>, %4, %cst_5 [1] : vector<4x256xf32> to vector<4xf32>
    %6 = vector.shape_cast %5 : vector<4xf32> to vector<4x1xf32>
    %cst_6 = arith.constant 3.906250e-03 : f32
    %7 = vector.broadcast %cst_6 : f32 to vector<4x1xf32>
    %8 = arith.mulf %6, %7 : vector<4x1xf32>
    %9 = vector.broadcast %8 : vector<4x1xf32> to vector<4x256xf32>
    %10 = arith.subf %4, %9 : vector<4x256xf32>
    %11 = arith.mulf %10, %10 : vector<4x256xf32>
    %cst_7 = arith.constant dense<0.000000e+00> : vector<4xf32>
    %12 = vector.multi_reduction <add>, %11, %cst_7 [1] : vector<4x256xf32> to vector<4xf32>
    %13 = vector.shape_cast %12 : vector<4xf32> to vector<4x1xf32>
    %cst_8 = arith.constant 3.906250e-03 : f32
    %14 = vector.broadcast %cst_8 : f32 to vector<4x1xf32>
    %15 = arith.mulf %13, %14 : vector<4x1xf32>
    %cst_9 = arith.constant 9.99999974E-6 : f32
    %16 = vector.broadcast %cst_9 : f32 to vector<4x1xf32>
    %17 = arith.addf %15, %16 : vector<4x1xf32>
    %18 = math.rsqrt %17 : vector<4x1xf32>
    %c0_10 = arith.constant 0 : index
    %c0_11 = arith.constant 0 : index
    %19 = vector.load %arg3[%c0_10, %c0_11] : memref<4x1xf32, #tpu.memory_space<vmem>>, vector<4x1xf32>
    %20 = arith.mulf %18, %19 : vector<4x1xf32>
    %21 = vector.broadcast %20 : vector<4x1xf32> to vector<4x256xf32>
    %22 = arith.mulf %10, %21 : vector<4x256xf32>
    %c0_12 = arith.constant 0 : index
    %c0_13 = arith.constant 0 : index
    %23 = vector.load %arg4[%c0_12, %c0_13] : memref<4x1xf32, #tpu.memory_space<vmem>>, vector<4x1xf32>
    %24 = vector.broadcast %23 : vector<4x1xf32> to vector<4x256xf32>
    %25 = arith.addf %22, %24 : vector<4x256xf32>
    %cst_14 = arith.constant 0.000000e+00 : f32
    %26 = vector.broadcast %cst_14 : f32 to vector<4x256xf32>
    %27 = arith.maximumf %25, %26 : vector<4x256xf32>
    %cst_15 = arith.constant 0.000000e+00 : f32
    %28 = vector.broadcast %cst_15 : f32 to vector<4x256xf32>
    %29 = tpu.concatenate %27, %28 in 0 : vector<4x256xf32>, vector<4x256xf32> -> vector<8x256xf32>
    %c0_16 = arith.constant 0 : index
    %c128 = arith.constant 128 : index
    %30 = vector.load %arg14[%c0_16, %c128] : memref<16x512xf32, #tpu.memory_space<vmem>>, vector<8x256xf32>
    tpu.vector_store %arg14[%c0_16, %c128], %29 {strides = array<i32>} : memref<16x512xf32, #tpu.memory_space<vmem>>, vector<8x256xf32>,
    %c1 = arith.constant 1 : index
    %c0_17 = arith.constant 0 : index
    %c0_18 = arith.constant 0 : index
    %31 = vector.load %arg1[%c1, %c0_17, %c0_18] : memref<2x4x256xf32, #tpu.memory_space<vmem>>, vector<1x4x256xf32>
    %32 = vector.shape_cast %31 : vector<1x4x256xf32> to vector<4x256xf32>
    %cst_19 = arith.constant dense<0.000000e+00> : vector<4xf32>
    %33 = vector.multi_reduction <add>, %32, %cst_19 [1] : vector<4x256xf32> to vector<4xf32>
    %34 = vector.shape_cast %33 : vector<4xf32> to vector<4x1xf32>
    %cst_20 = arith.constant 3.906250e-03 : f32
    %35 = vector.broadcast %cst_20 : f32 to vector<4x1xf32>
    %36 = arith.mulf %34, %35 : vector<4x1xf32>
    %37 = vector.broadcast %36 : vector<4x1xf32> to vector<4x256xf32>
    %38 = arith.subf %32, %37 : vector<4x256xf32>
    %39 = arith.mulf %38, %38 : vector<4x256xf32>
    %cst_21 = arith.constant dense<0.000000e+00> : vector<4xf32>
    %40 = vector.multi_reduction <add>, %39, %cst_21 [1] : vector<4x256xf32> to vector<4xf32>
    %41 = vector.shape_cast %40 : vector<4xf32> to vector<4x1xf32>
    %cst_22 = arith.constant 3.906250e-03 : f32
    %42 = vector.broadcast %cst_22 : f32 to vector<4x1xf32>
    %43 = arith.mulf %41, %42 : vector<4x1xf32>
    %cst_23 = arith.constant 9.99999974E-6 : f32
    %44 = vector.broadcast %cst_23 : f32 to vector<4x1xf32>
    %45 = arith.addf %43, %44 : vector<4x1xf32>
    %46 = math.rsqrt %45 : vector<4x1xf32>
    %c0_24 = arith.constant 0 : index
    %c0_25 = arith.constant 0 : index
    %47 = vector.load %arg3[%c0_24, %c0_25] : memref<4x1xf32, #tpu.memory_space<vmem>>, vector<4x1xf32>
    %48 = arith.mulf %46, %47 : vector<4x1xf32>
    %49 = vector.broadcast %48 : vector<4x1xf32> to vector<4x256xf32>
    %50 = arith.mulf %38, %49 : vector<4x256xf32>
    %c0_26 = arith.constant 0 : index
    %c0_27 = arith.constant 0 : index
    %51 = vector.load %arg4[%c0_26, %c0_27] : memref<4x1xf32, #tpu.memory_space<vmem>>, vector<4x1xf32>
    %52 = vector.broadcast %51 : vector<4x1xf32> to vector<4x256xf32>
    %53 = arith.addf %50, %52 : vector<4x256xf32>
    %cst_28 = arith.constant 0.000000e+00 : f32
    %54 = vector.broadcast %cst_28 : f32 to vector<4x256xf32>
    %55 = arith.maximumf %53, %54 : vector<4x256xf32>
    %cst_29 = arith.constant 0.000000e+00 : f32
    %56 = vector.broadcast %cst_29 : f32 to vector<4x256xf32>
    %57 = tpu.concatenate %55, %56 in 0 : vector<4x256xf32>, vector<4x256xf32> -> vector<8x256xf32>
    %c8 = arith.constant 8 : index
    %c128_30 = arith.constant 128 : index
    %58 = vector.load %arg14[%c8, %c128_30] : memref<16x512xf32, #tpu.memory_space<vmem>>, vector<8x256xf32>
    tpu.vector_store %arg14[%c8, %c128_30], %57 {strides = array<i32>} : memref<16x512xf32, #tpu.memory_space<vmem>>, vector<8x256xf32>,
    %c0_31 = arith.constant 0 : index
    %c111 = arith.constant 111 : index
    %59 = vector.load %arg14[%c0_31, %c111] : memref<16x512xf32, #tpu.memory_space<vmem>>, vector<8x256xf32>
    %c0_32 = arith.constant 0 : index
    %c0_33 = arith.constant 0 : index
    %60 = vector.load %arg2[%c0_32, %c0_33] : memref<16x256xf32, #tpu.memory_space<vmem>>, vector<1x256xf32>
    %61 = vector.broadcast %60 : vector<1x256xf32> to vector<8x256xf32>
    %62 = arith.mulf %59, %61 : vector<8x256xf32>
    %c0_34 = arith.constant 0 : index
    %c0_35 = arith.constant 0 : index
    %63 = vector.load %arg15[%c0_34, %c0_35] : memref<72x512xf32, #tpu.memory_space<vmem>>, vector<8x256xf32>
    tpu.vector_store %arg15[%c0_34, %c0_35], %62 {strides = array<i32>} : memref<72x512xf32, #tpu.memory_space<vmem>>, vector<8x256xf32>,
    %c0_36 = arith.constant 0 : index
    %c112 = arith.constant 112 : index
    %64 = vector.load %arg14[%c0_36, %c112] : memref<16x512xf32, #tpu.memory_space<vmem>>, vector<8x256xf32>
    %c1_37 = arith.constant 1 : index
    %c0_38 = arith.constant 0 : index
    %65 = vector.load %arg2[%c1_37, %c0_38] : memref<16x256xf32, #tpu.memory_space<vmem>>, vector<1x256xf32>
    %66 = vector.broadcast %65 : vector<1x256xf32> to vector<8x256xf32>
    %67 = arith.mulf %64, %66 : vector<8x256xf32>
    %c8_39 = arith.constant 8 : index
    %c0_40 = arith.constant 0 : index
    %68 = vector.load %arg15[%c8_39, %c0_40] : memref<72x512xf32, #tpu.memory_space<vmem>>, vector<8x256xf32>
    tpu.vector_store %arg15[%c8_39, %c0_40], %67 {strides = array<i32>} : memref<72x512xf32, #tpu.memory_space<vmem>>, vector<8x256xf32>,
    %c0_41 = arith.constant 0 : index
    %c113 = arith.constant 113 : index
    %69 = vector.load %arg14[%c0_41, %c113] : memref<16x512xf32, #tpu.memory_space<vmem>>, vector<8x256xf32>
    %c2 = arith.constant 2 : index
    %c0_42 = arith.constant 0 : index
    %70 = vector.load %arg2[%c2, %c0_42] : memref<16x256xf32, #tpu.memory_space<vmem>>, vector<1x256xf32>
    %71 = vector.broadcast %70 : vector<1x256xf32> to vector<8x256xf32>
    %72 = arith.mulf %69, %71 : vector<8x256xf32>
    %c16 = arith.constant 16 : index
    %c0_43 = arith.constant 0 : index
    %73 = vector.load %arg15[%c16, %c0_43] : memref<72x512xf32, #tpu.memory_space<vmem>>, vector<8x256xf32>
    tpu.vector_store %arg15[%c16, %c0_43], %72 {strides = array<i32>} : memref<72x512xf32, #tpu.memory_space<vmem>>, vector<8x256xf32>,
    %c0_44 = arith.constant 0 : index
    %c127 = arith.constant 127 : index
    %74 = vector.load %arg14[%c0_44, %c127] : memref<16x512xf32, #tpu.memory_space<vmem>>, vector<8x256xf32>
    %c3 = arith.constant 3 : index
    %c0_45 = arith.constant 0 : index
    %75 = vector.load %arg2[%c3, %c0_45] : memref<16x256xf32, #tpu.memory_space<vmem>>, vector<1x256xf32>
    %76 = vector.broadcast %75 : vector<1x256xf32> to vector<8x256xf32>
    %77 = arith.mulf %74, %76 : vector<8x256xf32>
    %c24 = arith.constant 24 : index
    %c0_46 = arith.constant 0 : index
    %78 = vector.load %arg15[%c24, %c0_46] : memref<72x512xf32, #tpu.memory_space<vmem>>, vector<8x256xf32>
    tpu.vector_store %arg15[%c24, %c0_46], %77 {strides = array<i32>} : memref<72x512xf32, #tpu.memory_space<vmem>>, vector<8x256xf32>,
    %c0_47 = arith.constant 0 : index
    %c128_48 = arith.constant 128 : index
    %79 = vector.load %arg14[%c0_47, %c128_48] : memref<16x512xf32, #tpu.memory_space<vmem>>, vector<8x256xf32>
    %c32 = arith.constant 32 : index
    %c0_49 = arith.constant 0 : index
    %80 = vector.load %arg15[%c32, %c0_49] : memref<72x512xf32, #tpu.memory_space<vmem>>, vector<8x256xf32>
    tpu.vector_store %arg15[%c32, %c0_49], %79 {strides = array<i32>} : memref<72x512xf32, #tpu.memory_space<vmem>>, vector<8x256xf32>,
    %c0_50 = arith.constant 0 : index
    %c129 = arith.constant 129 : index
    %81 = vector.load %arg14[%c0_50, %c129] : memref<16x512xf32, #tpu.memory_space<vmem>>, vector<8x256xf32>
    %c5 = arith.constant 5 : index
    %c0_51 = arith.constant 0 : index
    %82 = vector.load %arg2[%c5, %c0_51] : memref<16x256xf32, #tpu.memory_space<vmem>>, vector<1x256xf32>
    %83 = vector.broadcast %82 : vector<1x256xf32> to vector<8x256xf32>
    %84 = arith.mulf %81, %83 : vector<8x256xf32>
    %c40 = arith.constant 40 : index
    %c0_52 = arith.constant 0 : index
    %85 = vector.load %arg15[%c40, %c0_52] : memref<72x512xf32, #tpu.memory_space<vmem>>, vector<8x256xf32>
    tpu.vector_store %arg15[%c40, %c0_52], %84 {strides = array<i32>} : memref<72x512xf32, #tpu.memory_space<vmem>>, vector<8x256xf32>,
    %c0_53 = arith.constant 0 : index
    %c143 = arith.constant 143 : index
    %86 = vector.load %arg14[%c0_53, %c143] : memref<16x512xf32, #tpu.memory_space<vmem>>, vector<8x256xf32>
    %c6 = arith.constant 6 : index
    %c0_54 = arith.constant 0 : index
    %87 = vector.load %arg2[%c6, %c0_54] : memref<16x256xf32, #tpu.memory_space<vmem>>, vector<1x256xf32>
    %88 = vector.broadcast %87 : vector<1x256xf32> to vector<8x256xf32>
    %89 = arith.mulf %86, %88 : vector<8x256xf32>
    %c48 = arith.constant 48 : index
    %c0_55 = arith.constant 0 : index
    %90 = vector.load %arg15[%c48, %c0_55] : memref<72x512xf32, #tpu.memory_space<vmem>>, vector<8x256xf32>
    tpu.vector_store %arg15[%c48, %c0_55], %89 {strides = array<i32>} : memref<72x512xf32, #tpu.memory_space<vmem>>, vector<8x256xf32>,
    %c0_56 = arith.constant 0 : index
    %c144 = arith.constant 144 : index
    %91 = vector.load %arg14[%c0_56, %c144] : memref<16x512xf32, #tpu.memory_space<vmem>>, vector<8x256xf32>
    %c7 = arith.constant 7 : index
    %c0_57 = arith.constant 0 : index
    %92 = vector.load %arg2[%c7, %c0_57] : memref<16x256xf32, #tpu.memory_space<vmem>>, vector<1x256xf32>
    %93 = vector.broadcast %92 : vector<1x256xf32> to vector<8x256xf32>
    %94 = arith.mulf %91, %93 : vector<8x256xf32>
    %c56 = arith.constant 56 : index
    %c0_58 = arith.constant 0 : index
    %95 = vector.load %arg15[%c56, %c0_58] : memref<72x512xf32, #tpu.memory_space<vmem>>, vector<8x256xf32>
    tpu.vector_store %arg15[%c56, %c0_58], %94 {strides = array<i32>} : memref<72x512xf32, #tpu.memory_space<vmem>>, vector<8x256xf32>,
    %c0_59 = arith.constant 0 : index
    %c145 = arith.constant 145 : index
    %96 = vector.load %arg14[%c0_59, %c145] : memref<16x512xf32, #tpu.memory_space<vmem>>, vector<8x256xf32>
    %c8_60 = arith.constant 8 : index
    %c0_61 = arith.constant 0 : index
    %97 = vector.load %arg2[%c8_60, %c0_61] : memref<16x256xf32, #tpu.memory_space<vmem>>, vector<1x256xf32>
    %98 = vector.broadcast %97 : vector<1x256xf32> to vector<8x256xf32>
    %99 = arith.mulf %96, %98 : vector<8x256xf32>
    %c64 = arith.constant 64 : index
    %c0_62 = arith.constant 0 : index
    %100 = vector.load %arg15[%c64, %c0_62] : memref<72x512xf32, #tpu.memory_space<vmem>>, vector<8x256xf32>
    tpu.vector_store %arg15[%c64, %c0_62], %99 {strides = array<i32>} : memref<72x512xf32, #tpu.memory_space<vmem>>, vector<8x256xf32>,
    %c8_63 = arith.constant 8 : index
    %c111_64 = arith.constant 111 : index
    %101 = vector.load %arg14[%c8_63, %c111_64] : memref<16x512xf32, #tpu.memory_space<vmem>>, vector<8x256xf32>
    %c0_65 = arith.constant 0 : index
    %c0_66 = arith.constant 0 : index
    %102 = vector.load %arg2[%c0_65, %c0_66] : memref<16x256xf32, #tpu.memory_space<vmem>>, vector<1x256xf32>
    %103 = vector.broadcast %102 : vector<1x256xf32> to vector<8x256xf32>
    %104 = arith.mulf %101, %103 : vector<8x256xf32>
    %c0_67 = arith.constant 0 : index
    %c256 = arith.constant 256 : index
    %105 = vector.load %arg15[%c0_67, %c256] : memref<72x512xf32, #tpu.memory_space<vmem>>, vector<8x256xf32>
    tpu.vector_store %arg15[%c0_67, %c256], %104 {strides = array<i32>} : memref<72x512xf32, #tpu.memory_space<vmem>>, vector<8x256xf32>,
    %c8_68 = arith.constant 8 : index
    %c112_69 = arith.constant 112 : index
    %106 = vector.load %arg14[%c8_68, %c112_69] : memref<16x512xf32, #tpu.memory_space<vmem>>, vector<8x256xf32>
    %c1_70 = arith.constant 1 : index
    %c0_71 = arith.constant 0 : index
    %107 = vector.load %arg2[%c1_70, %c0_71] : memref<16x256xf32, #tpu.memory_space<vmem>>, vector<1x256xf32>
    %108 = vector.broadcast %107 : vector<1x256xf32> to vector<8x256xf32>
    %109 = arith.mulf %106, %108 : vector<8x256xf32>
    %c8_72 = arith.constant 8 : index
    %c256_73 = arith.constant 256 : index
    %110 = vector.load %arg15[%c8_72, %c256_73] : memref<72x512xf32, #tpu.memory_space<vmem>>, vector<8x256xf32>
    tpu.vector_store %arg15[%c8_72, %c256_73], %109 {strides = array<i32>} : memref<72x512xf32, #tpu.memory_space<vmem>>, vector<8x256xf32>,
    %c8_74 = arith.constant 8 : index
    %c113_75 = arith.constant 113 : index
    %111 = vector.load %arg14[%c8_74, %c113_75] : memref<16x512xf32, #tpu.memory_space<vmem>>, vector<8x256xf32>
    %c2_76 = arith.constant 2 : index
    %c0_77 = arith.constant 0 : index
    %112 = vector.load %arg2[%c2_76, %c0_77] : memref<16x256xf32, #tpu.memory_space<vmem>>, vector<1x256xf32>
    %113 = vector.broadcast %112 : vector<1x256xf32> to vector<8x256xf32>
    %114 = arith.mulf %111, %113 : vector<8x256xf32>
    %c16_78 = arith.constant 16 : index
    %c256_79 = arith.constant 256 : index
    %115 = vector.load %arg15[%c16_78, %c256_79] : memref<72x512xf32, #tpu.memory_space<vmem>>, vector<8x256xf32>
    tpu.vector_store %arg15[%c16_78, %c256_79], %114 {strides = array<i32>} : memref<72x512xf32, #tpu.memory_space<vmem>>, vector<8x256xf32>,
    %c8_80 = arith.constant 8 : index
    %c127_81 = arith.constant 127 : index
    %116 = vector.load %arg14[%c8_80, %c127_81] : memref<16x512xf32, #tpu.memory_space<vmem>>, vector<8x256xf32>
    %c3_82 = arith.constant 3 : index
    %c0_83 = arith.constant 0 : index
    %117 = vector.load %arg2[%c3_82, %c0_83] : memref<16x256xf32, #tpu.memory_space<vmem>>, vector<1x256xf32>
    %118 = vector.broadcast %117 : vector<1x256xf32> to vector<8x256xf32>
    %119 = arith.mulf %116, %118 : vector<8x256xf32>
    %c24_84 = arith.constant 24 : index
    %c256_85 = arith.constant 256 : index
    %120 = vector.load %arg15[%c24_84, %c256_85] : memref<72x512xf32, #tpu.memory_space<vmem>>, vector<8x256xf32>
    tpu.vector_store %arg15[%c24_84, %c256_85], %119 {strides = array<i32>} : memref<72x512xf32, #tpu.memory_space<vmem>>, vector<8x256xf32>,
    %c8_86 = arith.constant 8 : index
    %c128_87 = arith.constant 128 : index
    %121 = vector.load %arg14[%c8_86, %c128_87] : memref<16x512xf32, #tpu.memory_space<vmem>>, vector<8x256xf32>
    %c32_88 = arith.constant 32 : index
    %c256_89 = arith.constant 256 : index
    %122 = vector.load %arg15[%c32_88, %c256_89] : memref<72x512xf32, #tpu.memory_space<vmem>>, vector<8x256xf32>
    tpu.vector_store %arg15[%c32_88, %c256_89], %121 {strides = array<i32>} : memref<72x512xf32, #tpu.memory_space<vmem>>, vector<8x256xf32>,
    %c8_90 = arith.constant 8 : index
    %c129_91 = arith.constant 129 : index
    %123 = vector.load %arg14[%c8_90, %c129_91] : memref<16x512xf32, #tpu.memory_space<vmem>>, vector<8x256xf32>
    %c5_92 = arith.constant 5 : index
    %c0_93 = arith.constant 0 : index
    %124 = vector.load %arg2[%c5_92, %c0_93] : memref<16x256xf32, #tpu.memory_space<vmem>>, vector<1x256xf32>
    %125 = vector.broadcast %124 : vector<1x256xf32> to vector<8x256xf32>
    %126 = arith.mulf %123, %125 : vector<8x256xf32>
    %c40_94 = arith.constant 40 : index
    %c256_95 = arith.constant 256 : index
    %127 = vector.load %arg15[%c40_94, %c256_95] : memref<72x512xf32, #tpu.memory_space<vmem>>, vector<8x256xf32>
    tpu.vector_store %arg15[%c40_94, %c256_95], %126 {strides = array<i32>} : memref<72x512xf32, #tpu.memory_space<vmem>>, vector<8x256xf32>,
    %c8_96 = arith.constant 8 : index
    %c143_97 = arith.constant 143 : index
    %128 = vector.load %arg14[%c8_96, %c143_97] : memref<16x512xf32, #tpu.memory_space<vmem>>, vector<8x256xf32>
    %c6_98 = arith.constant 6 : index
    %c0_99 = arith.constant 0 : index
    %129 = vector.load %arg2[%c6_98, %c0_99] : memref<16x256xf32, #tpu.memory_space<vmem>>, vector<1x256xf32>
    %130 = vector.broadcast %129 : vector<1x256xf32> to vector<8x256xf32>
    %131 = arith.mulf %128, %130 : vector<8x256xf32>
    %c48_100 = arith.constant 48 : index
    %c256_101 = arith.constant 256 : index
    %132 = vector.load %arg15[%c48_100, %c256_101] : memref<72x512xf32, #tpu.memory_space<vmem>>, vector<8x256xf32>
    tpu.vector_store %arg15[%c48_100, %c256_101], %131 {strides = array<i32>} : memref<72x512xf32, #tpu.memory_space<vmem>>, vector<8x256xf32>,
    %c8_102 = arith.constant 8 : index
    %c144_103 = arith.constant 144 : index
    %133 = vector.load %arg14[%c8_102, %c144_103] : memref<16x512xf32, #tpu.memory_space<vmem>>, vector<8x256xf32>
    %c7_104 = arith.constant 7 : index
    %c0_105 = arith.constant 0 : index
    %134 = vector.load %arg2[%c7_104, %c0_105] : memref<16x256xf32, #tpu.memory_space<vmem>>, vector<1x256xf32>
    %135 = vector.broadcast %134 : vector<1x256xf32> to vector<8x256xf32>
    %136 = arith.mulf %133, %135 : vector<8x256xf32>
    %c56_106 = arith.constant 56 : index
    %c256_107 = arith.constant 256 : index
    %137 = vector.load %arg15[%c56_106, %c256_107] : memref<72x512xf32, #tpu.memory_space<vmem>>, vector<8x256xf32>
    tpu.vector_store %arg15[%c56_106, %c256_107], %136 {strides = array<i32>} : memref<72x512xf32, #tpu.memory_space<vmem>>, vector<8x256xf32>,
    %c8_108 = arith.constant 8 : index
    %c145_109 = arith.constant 145 : index
    %138 = vector.load %arg14[%c8_108, %c145_109] : memref<16x512xf32, #tpu.memory_space<vmem>>, vector<8x256xf32>
    %c8_110 = arith.constant 8 : index
    %c0_111 = arith.constant 0 : index
    %139 = vector.load %arg2[%c8_110, %c0_111] : memref<16x256xf32, #tpu.memory_space<vmem>>, vector<1x256xf32>
    %140 = vector.broadcast %139 : vector<1x256xf32> to vector<8x256xf32>
    %141 = arith.mulf %138, %140 : vector<8x256xf32>
    %c64_112 = arith.constant 64 : index
    %c256_113 = arith.constant 256 : index
    %142 = vector.load %arg15[%c64_112, %c256_113] : memref<72x512xf32, #tpu.memory_space<vmem>>, vector<8x256xf32>
    tpu.vector_store %arg15[%c64_112, %c256_113], %141 {strides = array<i32>} : memref<72x512xf32, #tpu.memory_space<vmem>>, vector<8x256xf32>,
    %c0_114 = arith.constant 0 : index
    %c0_115 = arith.constant 0 : index
    %143 = vector.load %arg5[%c0_114, %c0_115] : memref<4x72xf32, #tpu.memory_space<vmem>>, vector<4x72xf32>
    %c0_116 = arith.constant 0 : index
    %c0_117 = arith.constant 0 : index
    %144 = vector.load %arg15[%c0_116, %c0_117] : memref<72x512xf32, #tpu.memory_space<vmem>>, vector<72x512xf32>
    %cst_118 = arith.constant dense<0.000000e+00> : vector<4x512xf32>
    %145 = tpu.matmul %143, %144, %cst_118 {dimension_numbers = #tpu.dot_dimension_numbers<[1], [0], [0], [1], [0, 0, 1, 1], [], []>} : vector<4x72xf32>, vector<72x512xf32>, vector<4x512xf32> -> vector<4x512xf32>
    %146 = vector.extract_strided_slice %145 {offsets = [0, 0], sizes = [4, 256], strides = [1, 1]} : vector<4x512xf32> to vector<4x256xf32>
    %c0_119 = arith.constant 0 : index
    %c0_120 = arith.constant 0 : index
    %147 = vector.load %arg6[%c0_119, %c0_120] : memref<4x256xf32, #tpu.memory_space<vmem>>, vector<4x256xf32>
    %148 = arith.addf %146, %147 : vector<4x256xf32>
    %cst_121 = arith.constant dense<0.000000e+00> : vector<4xf32>
    %149 = vector.multi_reduction <add>, %148, %cst_121 [1] : vector<4x256xf32> to vector<4xf32>
    %150 = vector.shape_cast %149 : vector<4xf32> to vector<4x1xf32>
    %cst_122 = arith.constant 3.906250e-03 : f32
    %151 = vector.broadcast %cst_122 : f32 to vector<4x1xf32>
    %152 = arith.mulf %150, %151 : vector<4x1xf32>
    %153 = vector.broadcast %152 : vector<4x1xf32> to vector<4x256xf32>
    %154 = arith.subf %148, %153 : vector<4x256xf32>
    %155 = arith.mulf %154, %154 : vector<4x256xf32>
    %cst_123 = arith.constant dense<0.000000e+00> : vector<4xf32>
    %156 = vector.multi_reduction <add>, %155, %cst_123 [1] : vector<4x256xf32> to vector<4xf32>
    %157 = vector.shape_cast %156 : vector<4xf32> to vector<4x1xf32>
    %cst_124 = arith.constant 3.906250e-03 : f32
    %158 = vector.broadcast %cst_124 : f32 to vector<4x1xf32>
    %159 = arith.mulf %157, %158 : vector<4x1xf32>
    %cst_125 = arith.constant 9.99999974E-6 : f32
    %160 = vector.broadcast %cst_125 : f32 to vector<4x1xf32>
    %161 = arith.addf %159, %160 : vector<4x1xf32>
    %162 = math.rsqrt %161 : vector<4x1xf32>
    %c0_126 = arith.constant 0 : index
    %c0_127 = arith.constant 0 : index
    %163 = vector.load %arg7[%c0_126, %c0_127] : memref<4x1xf32, #tpu.memory_space<vmem>>, vector<4x1xf32>
    %164 = arith.mulf %162, %163 : vector<4x1xf32>
    %165 = vector.broadcast %164 : vector<4x1xf32> to vector<4x256xf32>
    %166 = arith.mulf %154, %165 : vector<4x256xf32>
    %c0_128 = arith.constant 0 : index
    %c0_129 = arith.constant 0 : index
    %167 = vector.load %arg8[%c0_128, %c0_129] : memref<4x1xf32, #tpu.memory_space<vmem>>, vector<4x1xf32>
    %168 = vector.broadcast %167 : vector<4x1xf32> to vector<4x256xf32>
    %169 = arith.addf %166, %168 : vector<4x256xf32>
    %cst_130 = arith.constant 0.000000e+00 : f32
    %170 = vector.broadcast %cst_130 : f32 to vector<4x256xf32>
    %171 = arith.maximumf %169, %170 : vector<4x256xf32>
    %cst_131 = arith.constant 0.000000e+00 : f32
    %172 = vector.broadcast %cst_131 : f32 to vector<4x256xf32>
    %173 = tpu.concatenate %171, %172 in 0 : vector<4x256xf32>, vector<4x256xf32> -> vector<8x256xf32>
    %c0_132 = arith.constant 0 : index
    %c128_133 = arith.constant 128 : index
    %174 = vector.load %arg14[%c0_132, %c128_133] : memref<16x512xf32, #tpu.memory_space<vmem>>, vector<8x256xf32>
    tpu.vector_store %arg14[%c0_132, %c128_133], %173 {strides = array<i32>} : memref<16x512xf32, #tpu.memory_space<vmem>>, vector<8x256xf32>,
    %175 = vector.extract_strided_slice %145 {offsets = [0, 256], sizes = [4, 256], strides = [1, 1]} : vector<4x512xf32> to vector<4x256xf32>
    %c0_134 = arith.constant 0 : index
    %c0_135 = arith.constant 0 : index
    %176 = vector.load %arg6[%c0_134, %c0_135] : memref<4x256xf32, #tpu.memory_space<vmem>>, vector<4x256xf32>
    %177 = arith.addf %175, %176 : vector<4x256xf32>
    %cst_136 = arith.constant dense<0.000000e+00> : vector<4xf32>
    %178 = vector.multi_reduction <add>, %177, %cst_136 [1] : vector<4x256xf32> to vector<4xf32>
    %179 = vector.shape_cast %178 : vector<4xf32> to vector<4x1xf32>
    %cst_137 = arith.constant 3.906250e-03 : f32
    %180 = vector.broadcast %cst_137 : f32 to vector<4x1xf32>
    %181 = arith.mulf %179, %180 : vector<4x1xf32>
    %182 = vector.broadcast %181 : vector<4x1xf32> to vector<4x256xf32>
    %183 = arith.subf %177, %182 : vector<4x256xf32>
    %184 = arith.mulf %183, %183 : vector<4x256xf32>
    %cst_138 = arith.constant dense<0.000000e+00> : vector<4xf32>
    %185 = vector.multi_reduction <add>, %184, %cst_138 [1] : vector<4x256xf32> to vector<4xf32>
    %186 = vector.shape_cast %185 : vector<4xf32> to vector<4x1xf32>
    %cst_139 = arith.constant 3.906250e-03 : f32
    %187 = vector.broadcast %cst_139 : f32 to vector<4x1xf32>
    %188 = arith.mulf %186, %187 : vector<4x1xf32>
    %cst_140 = arith.constant 9.99999974E-6 : f32
    %189 = vector.broadcast %cst_140 : f32 to vector<4x1xf32>
    %190 = arith.addf %188, %189 : vector<4x1xf32>
    %191 = math.rsqrt %190 : vector<4x1xf32>
    %c0_141 = arith.constant 0 : index
    %c0_142 = arith.constant 0 : index
    %192 = vector.load %arg7[%c0_141, %c0_142] : memref<4x1xf32, #tpu.memory_space<vmem>>, vector<4x1xf32>
    %193 = arith.mulf %191, %192 : vector<4x1xf32>
    %194 = vector.broadcast %193 : vector<4x1xf32> to vector<4x256xf32>
    %195 = arith.mulf %183, %194 : vector<4x256xf32>
    %c0_143 = arith.constant 0 : index
    %c0_144 = arith.constant 0 : index
    %196 = vector.load %arg8[%c0_143, %c0_144] : memref<4x1xf32, #tpu.memory_space<vmem>>, vector<4x1xf32>
    %197 = vector.broadcast %196 : vector<4x1xf32> to vector<4x256xf32>
    %198 = arith.addf %195, %197 : vector<4x256xf32>
    %cst_145 = arith.constant 0.000000e+00 : f32
    %199 = vector.broadcast %cst_145 : f32 to vector<4x256xf32>
    %200 = arith.maximumf %198, %199 : vector<4x256xf32>
    %cst_146 = arith.constant 0.000000e+00 : f32
    %201 = vector.broadcast %cst_146 : f32 to vector<4x256xf32>
    %202 = tpu.concatenate %200, %201 in 0 : vector<4x256xf32>, vector<4x256xf32> -> vector<8x256xf32>
    %c8_147 = arith.constant 8 : index
    %c128_148 = arith.constant 128 : index
    %203 = vector.load %arg14[%c8_147, %c128_148] : memref<16x512xf32, #tpu.memory_space<vmem>>, vector<8x256xf32>
    tpu.vector_store %arg14[%c8_147, %c128_148], %202 {strides = array<i32>} : memref<16x512xf32, #tpu.memory_space<vmem>>, vector<8x256xf32>,
    %c0_149 = arith.constant 0 : index
    %c111_150 = arith.constant 111 : index
    %204 = vector.load %arg14[%c0_149, %c111_150] : memref<16x512xf32, #tpu.memory_space<vmem>>, vector<8x256xf32>
    %c0_151 = arith.constant 0 : index
    %c0_152 = arith.constant 0 : index
    %205 = vector.load %arg2[%c0_151, %c0_152] : memref<16x256xf32, #tpu.memory_space<vmem>>, vector<1x256xf32>
    %206 = vector.broadcast %205 : vector<1x256xf32> to vector<8x256xf32>
    %207 = arith.mulf %204, %206 : vector<8x256xf32>
    %c0_153 = arith.constant 0 : index
    %c0_154 = arith.constant 0 : index
    %208 = vector.load %arg15[%c0_153, %c0_154] : memref<72x512xf32, #tpu.memory_space<vmem>>, vector<8x256xf32>
    tpu.vector_store %arg15[%c0_153, %c0_154], %207 {strides = array<i32>} : memref<72x512xf32, #tpu.memory_space<vmem>>, vector<8x256xf32>,
    %c0_155 = arith.constant 0 : index
    %c112_156 = arith.constant 112 : index
    %209 = vector.load %arg14[%c0_155, %c112_156] : memref<16x512xf32, #tpu.memory_space<vmem>>, vector<8x256xf32>
    %c1_157 = arith.constant 1 : index
    %c0_158 = arith.constant 0 : index
    %210 = vector.load %arg2[%c1_157, %c0_158] : memref<16x256xf32, #tpu.memory_space<vmem>>, vector<1x256xf32>
    %211 = vector.broadcast %210 : vector<1x256xf32> to vector<8x256xf32>
    %212 = arith.mulf %209, %211 : vector<8x256xf32>
    %c8_159 = arith.constant 8 : index
    %c0_160 = arith.constant 0 : index
    %213 = vector.load %arg15[%c8_159, %c0_160] : memref<72x512xf32, #tpu.memory_space<vmem>>, vector<8x256xf32>
    tpu.vector_store %arg15[%c8_159, %c0_160], %212 {strides = array<i32>} : memref<72x512xf32, #tpu.memory_space<vmem>>, vector<8x256xf32>,
    %c0_161 = arith.constant 0 : index
    %c113_162 = arith.constant 113 : index
    %214 = vector.load %arg14[%c0_161, %c113_162] : memref<16x512xf32, #tpu.memory_space<vmem>>, vector<8x256xf32>
    %c2_163 = arith.constant 2 : index
    %c0_164 = arith.constant 0 : index
    %215 = vector.load %arg2[%c2_163, %c0_164] : memref<16x256xf32, #tpu.memory_space<vmem>>, vector<1x256xf32>
    %216 = vector.broadcast %215 : vector<1x256xf32> to vector<8x256xf32>
    %217 = arith.mulf %214, %216 : vector<8x256xf32>
    %c16_165 = arith.constant 16 : index
    %c0_166 = arith.constant 0 : index
    %218 = vector.load %arg15[%c16_165, %c0_166] : memref<72x512xf32, #tpu.memory_space<vmem>>, vector<8x256xf32>
    tpu.vector_store %arg15[%c16_165, %c0_166], %217 {strides = array<i32>} : memref<72x512xf32, #tpu.memory_space<vmem>>, vector<8x256xf32>,
    %c0_167 = arith.constant 0 : index
    %c127_168 = arith.constant 127 : index
    %219 = vector.load %arg14[%c0_167, %c127_168] : memref<16x512xf32, #tpu.memory_space<vmem>>, vector<8x256xf32>
    %c3_169 = arith.constant 3 : index
    %c0_170 = arith.constant 0 : index
    %220 = vector.load %arg2[%c3_169, %c0_170] : memref<16x256xf32, #tpu.memory_space<vmem>>, vector<1x256xf32>
    %221 = vector.broadcast %220 : vector<1x256xf32> to vector<8x256xf32>
    %222 = arith.mulf %219, %221 : vector<8x256xf32>
    %c24_171 = arith.constant 24 : index
    %c0_172 = arith.constant 0 : index
    %223 = vector.load %arg15[%c24_171, %c0_172] : memref<72x512xf32, #tpu.memory_space<vmem>>, vector<8x256xf32>
    tpu.vector_store %arg15[%c24_171, %c0_172], %222 {strides = array<i32>} : memref<72x512xf32, #tpu.memory_space<vmem>>, vector<8x256xf32>,
    %c0_173 = arith.constant 0 : index
    %c128_174 = arith.constant 128 : index
    %224 = vector.load %arg14[%c0_173, %c128_174] : memref<16x512xf32, #tpu.memory_space<vmem>>, vector<8x256xf32>
    %c32_175 = arith.constant 32 : index
    %c0_176 = arith.constant 0 : index
    %225 = vector.load %arg15[%c32_175, %c0_176] : memref<72x512xf32, #tpu.memory_space<vmem>>, vector<8x256xf32>
    tpu.vector_store %arg15[%c32_175, %c0_176], %224 {strides = array<i32>} : memref<72x512xf32, #tpu.memory_space<vmem>>, vector<8x256xf32>,
    %c0_177 = arith.constant 0 : index
    %c129_178 = arith.constant 129 : index
    %226 = vector.load %arg14[%c0_177, %c129_178] : memref<16x512xf32, #tpu.memory_space<vmem>>, vector<8x256xf32>
    %c5_179 = arith.constant 5 : index
    %c0_180 = arith.constant 0 : index
    %227 = vector.load %arg2[%c5_179, %c0_180] : memref<16x256xf32, #tpu.memory_space<vmem>>, vector<1x256xf32>
    %228 = vector.broadcast %227 : vector<1x256xf32> to vector<8x256xf32>
    %229 = arith.mulf %226, %228 : vector<8x256xf32>
    %c40_181 = arith.constant 40 : index
    %c0_182 = arith.constant 0 : index
    %230 = vector.load %arg15[%c40_181, %c0_182] : memref<72x512xf32, #tpu.memory_space<vmem>>, vector<8x256xf32>
    tpu.vector_store %arg15[%c40_181, %c0_182], %229 {strides = array<i32>} : memref<72x512xf32, #tpu.memory_space<vmem>>, vector<8x256xf32>,
    %c0_183 = arith.constant 0 : index
    %c143_184 = arith.constant 143 : index
    %231 = vector.load %arg14[%c0_183, %c143_184] : memref<16x512xf32, #tpu.memory_space<vmem>>, vector<8x256xf32>
    %c6_185 = arith.constant 6 : index
    %c0_186 = arith.constant 0 : index
    %232 = vector.load %arg2[%c6_185, %c0_186] : memref<16x256xf32, #tpu.memory_space<vmem>>, vector<1x256xf32>
    %233 = vector.broadcast %232 : vector<1x256xf32> to vector<8x256xf32>
    %234 = arith.mulf %231, %233 : vector<8x256xf32>
    %c48_187 = arith.constant 48 : index
    %c0_188 = arith.constant 0 : index
    %235 = vector.load %arg15[%c48_187, %c0_188] : memref<72x512xf32, #tpu.memory_space<vmem>>, vector<8x256xf32>
    tpu.vector_store %arg15[%c48_187, %c0_188], %234 {strides = array<i32>} : memref<72x512xf32, #tpu.memory_space<vmem>>, vector<8x256xf32>,
    %c0_189 = arith.constant 0 : index
    %c144_190 = arith.constant 144 : index
    %236 = vector.load %arg14[%c0_189, %c144_190] : memref<16x512xf32, #tpu.memory_space<vmem>>, vector<8x256xf32>
    %c7_191 = arith.constant 7 : index
    %c0_192 = arith.constant 0 : index
    %237 = vector.load %arg2[%c7_191, %c0_192] : memref<16x256xf32, #tpu.memory_space<vmem>>, vector<1x256xf32>
    %238 = vector.broadcast %237 : vector<1x256xf32> to vector<8x256xf32>
    %239 = arith.mulf %236, %238 : vector<8x256xf32>
    %c56_193 = arith.constant 56 : index
    %c0_194 = arith.constant 0 : index
    %240 = vector.load %arg15[%c56_193, %c0_194] : memref<72x512xf32, #tpu.memory_space<vmem>>, vector<8x256xf32>
    tpu.vector_store %arg15[%c56_193, %c0_194], %239 {strides = array<i32>} : memref<72x512xf32, #tpu.memory_space<vmem>>, vector<8x256xf32>,
    %c0_195 = arith.constant 0 : index
    %c145_196 = arith.constant 145 : index
    %241 = vector.load %arg14[%c0_195, %c145_196] : memref<16x512xf32, #tpu.memory_space<vmem>>, vector<8x256xf32>
    %c8_197 = arith.constant 8 : index
    %c0_198 = arith.constant 0 : index
    %242 = vector.load %arg2[%c8_197, %c0_198] : memref<16x256xf32, #tpu.memory_space<vmem>>, vector<1x256xf32>
    %243 = vector.broadcast %242 : vector<1x256xf32> to vector<8x256xf32>
    %244 = arith.mulf %241, %243 : vector<8x256xf32>
    %c64_199 = arith.constant 64 : index
    %c0_200 = arith.constant 0 : index
    %245 = vector.load %arg15[%c64_199, %c0_200] : memref<72x512xf32, #tpu.memory_space<vmem>>, vector<8x256xf32>
    tpu.vector_store %arg15[%c64_199, %c0_200], %244 {strides = array<i32>} : memref<72x512xf32, #tpu.memory_space<vmem>>, vector<8x256xf32>,
    %c8_201 = arith.constant 8 : index
    %c111_202 = arith.constant 111 : index
    %246 = vector.load %arg14[%c8_201, %c111_202] : memref<16x512xf32, #tpu.memory_space<vmem>>, vector<8x256xf32>
    %c0_203 = arith.constant 0 : index
    %c0_204 = arith.constant 0 : index
    %247 = vector.load %arg2[%c0_203, %c0_204] : memref<16x256xf32, #tpu.memory_space<vmem>>, vector<1x256xf32>
    %248 = vector.broadcast %247 : vector<1x256xf32> to vector<8x256xf32>
    %249 = arith.mulf %246, %248 : vector<8x256xf32>
    %c0_205 = arith.constant 0 : index
    %c256_206 = arith.constant 256 : index
    %250 = vector.load %arg15[%c0_205, %c256_206] : memref<72x512xf32, #tpu.memory_space<vmem>>, vector<8x256xf32>
    tpu.vector_store %arg15[%c0_205, %c256_206], %249 {strides = array<i32>} : memref<72x512xf32, #tpu.memory_space<vmem>>, vector<8x256xf32>,
    %c8_207 = arith.constant 8 : index
    %c112_208 = arith.constant 112 : index
    %251 = vector.load %arg14[%c8_207, %c112_208] : memref<16x512xf32, #tpu.memory_space<vmem>>, vector<8x256xf32>
    %c1_209 = arith.constant 1 : index
    %c0_210 = arith.constant 0 : index
    %252 = vector.load %arg2[%c1_209, %c0_210] : memref<16x256xf32, #tpu.memory_space<vmem>>, vector<1x256xf32>
    %253 = vector.broadcast %252 : vector<1x256xf32> to vector<8x256xf32>
    %254 = arith.mulf %251, %253 : vector<8x256xf32>
    %c8_211 = arith.constant 8 : index
    %c256_212 = arith.constant 256 : index
    %255 = vector.load %arg15[%c8_211, %c256_212] : memref<72x512xf32, #tpu.memory_space<vmem>>, vector<8x256xf32>
    tpu.vector_store %arg15[%c8_211, %c256_212], %254 {strides = array<i32>} : memref<72x512xf32, #tpu.memory_space<vmem>>, vector<8x256xf32>,
    %c8_213 = arith.constant 8 : index
    %c113_214 = arith.constant 113 : index
    %256 = vector.load %arg14[%c8_213, %c113_214] : memref<16x512xf32, #tpu.memory_space<vmem>>, vector<8x256xf32>
    %c2_215 = arith.constant 2 : index
    %c0_216 = arith.constant 0 : index
    %257 = vector.load %arg2[%c2_215, %c0_216] : memref<16x256xf32, #tpu.memory_space<vmem>>, vector<1x256xf32>
    %258 = vector.broadcast %257 : vector<1x256xf32> to vector<8x256xf32>
    %259 = arith.mulf %256, %258 : vector<8x256xf32>
    %c16_217 = arith.constant 16 : index
    %c256_218 = arith.constant 256 : index
    %260 = vector.load %arg15[%c16_217, %c256_218] : memref<72x512xf32, #tpu.memory_space<vmem>>, vector<8x256xf32>
    tpu.vector_store %arg15[%c16_217, %c256_218], %259 {strides = array<i32>} : memref<72x512xf32, #tpu.memory_space<vmem>>, vector<8x256xf32>,
    %c8_219 = arith.constant 8 : index
    %c127_220 = arith.constant 127 : index
    %261 = vector.load %arg14[%c8_219, %c127_220] : memref<16x512xf32, #tpu.memory_space<vmem>>, vector<8x256xf32>
    %c3_221 = arith.constant 3 : index
    %c0_222 = arith.constant 0 : index
    %262 = vector.load %arg2[%c3_221, %c0_222] : memref<16x256xf32, #tpu.memory_space<vmem>>, vector<1x256xf32>
    %263 = vector.broadcast %262 : vector<1x256xf32> to vector<8x256xf32>
    %264 = arith.mulf %261, %263 : vector<8x256xf32>
    %c24_223 = arith.constant 24 : index
    %c256_224 = arith.constant 256 : index
    %265 = vector.load %arg15[%c24_223, %c256_224] : memref<72x512xf32, #tpu.memory_space<vmem>>, vector<8x256xf32>
    tpu.vector_store %arg15[%c24_223, %c256_224], %264 {strides = array<i32>} : memref<72x512xf32, #tpu.memory_space<vmem>>, vector<8x256xf32>,
    %c8_225 = arith.constant 8 : index
    %c128_226 = arith.constant 128 : index
    %266 = vector.load %arg14[%c8_225, %c128_226] : memref<16x512xf32, #tpu.memory_space<vmem>>, vector<8x256xf32>
    %c32_227 = arith.constant 32 : index
    %c256_228 = arith.constant 256 : index
    %267 = vector.load %arg15[%c32_227, %c256_228] : memref<72x512xf32, #tpu.memory_space<vmem>>, vector<8x256xf32>
    tpu.vector_store %arg15[%c32_227, %c256_228], %266 {strides = array<i32>} : memref<72x512xf32, #tpu.memory_space<vmem>>, vector<8x256xf32>,
    %c8_229 = arith.constant 8 : index
    %c129_230 = arith.constant 129 : index
    %268 = vector.load %arg14[%c8_229, %c129_230] : memref<16x512xf32, #tpu.memory_space<vmem>>, vector<8x256xf32>
    %c5_231 = arith.constant 5 : index
    %c0_232 = arith.constant 0 : index
    %269 = vector.load %arg2[%c5_231, %c0_232] : memref<16x256xf32, #tpu.memory_space<vmem>>, vector<1x256xf32>
    %270 = vector.broadcast %269 : vector<1x256xf32> to vector<8x256xf32>
    %271 = arith.mulf %268, %270 : vector<8x256xf32>
    %c40_233 = arith.constant 40 : index
    %c256_234 = arith.constant 256 : index
    %272 = vector.load %arg15[%c40_233, %c256_234] : memref<72x512xf32, #tpu.memory_space<vmem>>, vector<8x256xf32>
    tpu.vector_store %arg15[%c40_233, %c256_234], %271 {strides = array<i32>} : memref<72x512xf32, #tpu.memory_space<vmem>>, vector<8x256xf32>,
    %c8_235 = arith.constant 8 : index
    %c143_236 = arith.constant 143 : index
    %273 = vector.load %arg14[%c8_235, %c143_236] : memref<16x512xf32, #tpu.memory_space<vmem>>, vector<8x256xf32>
    %c6_237 = arith.constant 6 : index
    %c0_238 = arith.constant 0 : index
    %274 = vector.load %arg2[%c6_237, %c0_238] : memref<16x256xf32, #tpu.memory_space<vmem>>, vector<1x256xf32>
    %275 = vector.broadcast %274 : vector<1x256xf32> to vector<8x256xf32>
    %276 = arith.mulf %273, %275 : vector<8x256xf32>
    %c48_239 = arith.constant 48 : index
    %c256_240 = arith.constant 256 : index
    %277 = vector.load %arg15[%c48_239, %c256_240] : memref<72x512xf32, #tpu.memory_space<vmem>>, vector<8x256xf32>
    tpu.vector_store %arg15[%c48_239, %c256_240], %276 {strides = array<i32>} : memref<72x512xf32, #tpu.memory_space<vmem>>, vector<8x256xf32>,
    %c8_241 = arith.constant 8 : index
    %c144_242 = arith.constant 144 : index
    %278 = vector.load %arg14[%c8_241, %c144_242] : memref<16x512xf32, #tpu.memory_space<vmem>>, vector<8x256xf32>
    %c7_243 = arith.constant 7 : index
    %c0_244 = arith.constant 0 : index
    %279 = vector.load %arg2[%c7_243, %c0_244] : memref<16x256xf32, #tpu.memory_space<vmem>>, vector<1x256xf32>
    %280 = vector.broadcast %279 : vector<1x256xf32> to vector<8x256xf32>
    %281 = arith.mulf %278, %280 : vector<8x256xf32>
    %c56_245 = arith.constant 56 : index
    %c256_246 = arith.constant 256 : index
    %282 = vector.load %arg15[%c56_245, %c256_246] : memref<72x512xf32, #tpu.memory_space<vmem>>, vector<8x256xf32>
    tpu.vector_store %arg15[%c56_245, %c256_246], %281 {strides = array<i32>} : memref<72x512xf32, #tpu.memory_space<vmem>>, vector<8x256xf32>,
    %c8_247 = arith.constant 8 : index
    %c145_248 = arith.constant 145 : index
    %283 = vector.load %arg14[%c8_247, %c145_248] : memref<16x512xf32, #tpu.memory_space<vmem>>, vector<8x256xf32>
    %c8_249 = arith.constant 8 : index
    %c0_250 = arith.constant 0 : index
    %284 = vector.load %arg2[%c8_249, %c0_250] : memref<16x256xf32, #tpu.memory_space<vmem>>, vector<1x256xf32>
    %285 = vector.broadcast %284 : vector<1x256xf32> to vector<8x256xf32>
    %286 = arith.mulf %283, %285 : vector<8x256xf32>
    %c64_251 = arith.constant 64 : index
    %c256_252 = arith.constant 256 : index
    %287 = vector.load %arg15[%c64_251, %c256_252] : memref<72x512xf32, #tpu.memory_space<vmem>>, vector<8x256xf32>
    tpu.vector_store %arg15[%c64_251, %c256_252], %286 {strides = array<i32>} : memref<72x512xf32, #tpu.memory_space<vmem>>, vector<8x256xf32>,
    %c0_253 = arith.constant 0 : index
    %c0_254 = arith.constant 0 : index
    %288 = vector.load %arg9[%c0_253, %c0_254] : memref<4x72xf32, #tpu.memory_space<vmem>>, vector<4x72xf32>
    %c0_255 = arith.constant 0 : index
    %c0_256 = arith.constant 0 : index
    %289 = vector.load %arg15[%c0_255, %c0_256] : memref<72x512xf32, #tpu.memory_space<vmem>>, vector<72x512xf32>
    %cst_257 = arith.constant dense<0.000000e+00> : vector<4x512xf32>
    %290 = tpu.matmul %288, %289, %cst_257 {dimension_numbers = #tpu.dot_dimension_numbers<[1], [0], [0], [1], [0, 0, 1, 1], [], []>} : vector<4x72xf32>, vector<72x512xf32>, vector<4x512xf32> -> vector<4x512xf32>
    %291 = vector.extract_strided_slice %290 {offsets = [0, 0], sizes = [4, 256], strides = [1, 1]} : vector<4x512xf32> to vector<4x256xf32>
    %c0_258 = arith.constant 0 : index
    %c0_259 = arith.constant 0 : index
    %292 = vector.load %arg10[%c0_258, %c0_259] : memref<4x256xf32, #tpu.memory_space<vmem>>, vector<4x256xf32>
    %293 = arith.addf %291, %292 : vector<4x256xf32>
    %cst_260 = arith.constant dense<0.000000e+00> : vector<4xf32>
    %294 = vector.multi_reduction <add>, %293, %cst_260 [1] : vector<4x256xf32> to vector<4xf32>
    %295 = vector.shape_cast %294 : vector<4xf32> to vector<4x1xf32>
    %cst_261 = arith.constant 3.906250e-03 : f32
    %296 = vector.broadcast %cst_261 : f32 to vector<4x1xf32>
    %297 = arith.mulf %295, %296 : vector<4x1xf32>
    %298 = vector.broadcast %297 : vector<4x1xf32> to vector<4x256xf32>
    %299 = arith.subf %293, %298 : vector<4x256xf32>
    %300 = arith.mulf %299, %299 : vector<4x256xf32>
    %cst_262 = arith.constant dense<0.000000e+00> : vector<4xf32>
    %301 = vector.multi_reduction <add>, %300, %cst_262 [1] : vector<4x256xf32> to vector<4xf32>
    %302 = vector.shape_cast %301 : vector<4xf32> to vector<4x1xf32>
    %cst_263 = arith.constant 3.906250e-03 : f32
    %303 = vector.broadcast %cst_263 : f32 to vector<4x1xf32>
    %304 = arith.mulf %302, %303 : vector<4x1xf32>
    %cst_264 = arith.constant 9.99999974E-6 : f32
    %305 = vector.broadcast %cst_264 : f32 to vector<4x1xf32>
    %306 = arith.addf %304, %305 : vector<4x1xf32>
    %307 = math.rsqrt %306 : vector<4x1xf32>
    %c0_265 = arith.constant 0 : index
    %c0_266 = arith.constant 0 : index
    %308 = vector.load %arg11[%c0_265, %c0_266] : memref<4x1xf32, #tpu.memory_space<vmem>>, vector<4x1xf32>
    %309 = arith.mulf %307, %308 : vector<4x1xf32>
    %310 = vector.broadcast %309 : vector<4x1xf32> to vector<4x256xf32>
    %311 = arith.mulf %299, %310 : vector<4x256xf32>
    %c0_267 = arith.constant 0 : index
    %c0_268 = arith.constant 0 : index
    %312 = vector.load %arg12[%c0_267, %c0_268] : memref<4x1xf32, #tpu.memory_space<vmem>>, vector<4x1xf32>
    %313 = vector.broadcast %312 : vector<4x1xf32> to vector<4x256xf32>
    %314 = arith.addf %311, %313 : vector<4x256xf32>
    %c0_269 = arith.constant 0 : index
    %c0_270 = arith.constant 0 : index
    %c0_271 = arith.constant 0 : index
    %315 = vector.load %arg13[%c0_269, %c0_270, %c0_271] : memref<2x4x256xf32, #tpu.memory_space<vmem>>, vector<1x4x256xf32>
    %316 = vector.shape_cast %315 : vector<1x4x256xf32> to vector<4x256xf32>
    %317 = vector.shape_cast %314 : vector<4x256xf32> to vector<1x4x256xf32>
    tpu.vector_store %arg13[%c0_269, %c0_270, %c0_271], %317 {strides = array<i32>} : memref<2x4x256xf32, #tpu.memory_space<vmem>>, vector<1x4x256xf32>,
    %318 = vector.extract_strided_slice %290 {offsets = [0, 256], sizes = [4, 256], strides = [1, 1]} : vector<4x512xf32> to vector<4x256xf32>
    %c0_272 = arith.constant 0 : index
    %c0_273 = arith.constant 0 : index
    %319 = vector.load %arg10[%c0_272, %c0_273] : memref<4x256xf32, #tpu.memory_space<vmem>>, vector<4x256xf32>
    %320 = arith.addf %318, %319 : vector<4x256xf32>
    %cst_274 = arith.constant dense<0.000000e+00> : vector<4xf32>
    %321 = vector.multi_reduction <add>, %320, %cst_274 [1] : vector<4x256xf32> to vector<4xf32>
    %322 = vector.shape_cast %321 : vector<4xf32> to vector<4x1xf32>
    %cst_275 = arith.constant 3.906250e-03 : f32
    %323 = vector.broadcast %cst_275 : f32 to vector<4x1xf32>
    %324 = arith.mulf %322, %323 : vector<4x1xf32>
    %325 = vector.broadcast %324 : vector<4x1xf32> to vector<4x256xf32>
    %326 = arith.subf %320, %325 : vector<4x256xf32>
    %327 = arith.mulf %326, %326 : vector<4x256xf32>
    %cst_276 = arith.constant dense<0.000000e+00> : vector<4xf32>
    %328 = vector.multi_reduction <add>, %327, %cst_276 [1] : vector<4x256xf32> to vector<4xf32>
    %329 = vector.shape_cast %328 : vector<4xf32> to vector<4x1xf32>
    %cst_277 = arith.constant 3.906250e-03 : f32
    %330 = vector.broadcast %cst_277 : f32 to vector<4x1xf32>
    %331 = arith.mulf %329, %330 : vector<4x1xf32>
    %cst_278 = arith.constant 9.99999974E-6 : f32
    %332 = vector.broadcast %cst_278 : f32 to vector<4x1xf32>
    %333 = arith.addf %331, %332 : vector<4x1xf32>
    %334 = math.rsqrt %333 : vector<4x1xf32>
    %c0_279 = arith.constant 0 : index
    %c0_280 = arith.constant 0 : index
    %335 = vector.load %arg11[%c0_279, %c0_280] : memref<4x1xf32, #tpu.memory_space<vmem>>, vector<4x1xf32>
    %336 = arith.mulf %334, %335 : vector<4x1xf32>
    %337 = vector.broadcast %336 : vector<4x1xf32> to vector<4x256xf32>
    %338 = arith.mulf %326, %337 : vector<4x256xf32>
    %c0_281 = arith.constant 0 : index
    %c0_282 = arith.constant 0 : index
    %339 = vector.load %arg12[%c0_281, %c0_282] : memref<4x1xf32, #tpu.memory_space<vmem>>, vector<4x1xf32>
    %340 = vector.broadcast %339 : vector<4x1xf32> to vector<4x256xf32>
    %341 = arith.addf %338, %340 : vector<4x256xf32>
    %c1_283 = arith.constant 1 : index
    %c0_284 = arith.constant 0 : index
    %c0_285 = arith.constant 0 : index
    %342 = vector.load %arg13[%c1_283, %c0_284, %c0_285] : memref<2x4x256xf32, #tpu.memory_space<vmem>>, vector<1x4x256xf32>
    %343 = vector.shape_cast %342 : vector<1x4x256xf32> to vector<4x256xf32>
    %344 = vector.shape_cast %341 : vector<4x256xf32> to vector<1x4x256xf32>
    tpu.vector_store %arg13[%c1_283, %c0_284, %c0_285], %344 {strides = array<i32>} : memref<2x4x256xf32, #tpu.memory_space<vmem>>, vector<1x4x256xf32>,
    return
  }
  func.func @transform_0(%arg0: i32) -> (i32, i32, i32) {
    %c0_i32 = arith.constant 0 : i32
    %c0_i32_0 = arith.constant 0 : i32
    %c0_i32_1 = arith.constant 0 : i32
    return %arg0, %c0_i32, %c0_i32_0 : i32, i32, i32
  }
  func.func @transform_1(%arg0: i32) -> (i32, i32) {
    %c0_i32 = arith.constant 0 : i32
    %c0_i32_0 = arith.constant 0 : i32
    %c0_i32_1 = arith.constant 0 : i32
    return %c0_i32, %c0_i32_0 : i32, i32
  }
  func.func @transform_2(%arg0: i32) -> (i32, i32) {
    %c0_i32 = arith.constant 0 : i32
    %c0_i32_0 = arith.constant 0 : i32
    %c0_i32_1 = arith.constant 0 : i32
    return %c0_i32, %c0_i32_0 : i32, i32
  }
  func.func @transform_3(%arg0: i32) -> (i32, i32) {
    %c0_i32 = arith.constant 0 : i32
    %c0_i32_0 = arith.constant 0 : i32
    %c0_i32_1 = arith.constant 0 : i32
    return %c0_i32, %c0_i32_0 : i32, i32
  }
  func.func @transform_4(%arg0: i32) -> (i32, i32) {
    %c0_i32 = arith.constant 0 : i32
    %c0_i32_0 = arith.constant 0 : i32
    %c0_i32_1 = arith.constant 0 : i32
    return %c0_i32, %c0_i32_0 : i32, i32
  }
  func.func @transform_5(%arg0: i32) -> (i32, i32) {
    %c0_i32 = arith.constant 0 : i32
    %c0_i32_0 = arith.constant 0 : i32
    %c0_i32_1 = arith.constant 0 : i32
    return %c0_i32, %c0_i32_0 : i32, i32
  }
  func.func @transform_6(%arg0: i32) -> (i32, i32) {
    %c0_i32 = arith.constant 0 : i32
    %c0_i32_0 = arith.constant 0 : i32
    %c0_i32_1 = arith.constant 0 : i32
    return %c0_i32, %c0_i32_0 : i32, i32
  }
  func.func @transform_7(%arg0: i32) -> (i32, i32) {
    %c0_i32 = arith.constant 0 : i32
    %c0_i32_0 = arith.constant 0 : i32
    %c0_i32_1 = arith.constant 0 : i32
    return %c0_i32, %c0_i32_0 : i32, i32
  }
  func.func @transform_8(%arg0: i32) -> (i32, i32) {
    %c0_i32 = arith.constant 0 : i32
    %c0_i32_0 = arith.constant 0 : i32
    %c0_i32_1 = arith.constant 0 : i32
    return %c0_i32, %c0_i32_0 : i32, i32
  }
  func.func @transform_9(%arg0: i32) -> (i32, i32) {
    %c0_i32 = arith.constant 0 : i32
    %c0_i32_0 = arith.constant 0 : i32
    %c0_i32_1 = arith.constant 0 : i32
    return %c0_i32, %c0_i32_0 : i32, i32
  }
  func.func @transform_10(%arg0: i32) -> (i32, i32) {
    %c0_i32 = arith.constant 0 : i32
    %c0_i32_0 = arith.constant 0 : i32
    %c0_i32_1 = arith.constant 0 : i32
    return %c0_i32, %c0_i32_0 : i32, i32
  }
  func.func @transform_11(%arg0: i32) -> (i32, i32) {
    %c0_i32 = arith.constant 0 : i32
    %c0_i32_0 = arith.constant 0 : i32
    %c0_i32_1 = arith.constant 0 : i32
    return %c0_i32, %c0_i32_0 : i32, i32
  }
  func.func @transform_12(%arg0: i32) -> (i32, i32, i32) {
    %c0_i32 = arith.constant 0 : i32
    %c0_i32_0 = arith.constant 0 : i32
    %c0_i32_1 = arith.constant 0 : i32
    return %arg0, %c0_i32, %c0_i32_0 : i32, i32, i32
  }
}

</mosaic_0001>

<bundles_post_ra>
// kernel: tpu_custom_call.1
= control target key start
LH: loop header
LB: loop body
LE: loop exit
PB: predicated region body
PF: predicated region fallthrough
CT: control target
= control target key end

     0   :  { %17 = vsyncpa [#allocation5], 0  ;;  %s3496_s0 = inlined_call_operand.hbm [shape: f32[2,4,256], index: 0, kind: input, shape index: {}]   ;;  %s3497_s1 = inlined_call_operand.vmem [shape: f32[16,256], index: 1, kind: input, shape index: {}]   ;;  %s3498_s2 = inlined_call_operand.vmem [shape: f32[4,1], index: 2, kind: input, shape index: {}]   ;;  %s3499_s3 = inlined_call_operand.vmem [shape: f32[4,1], index: 3, kind: input, shape index: {}]   ;;  %s3500_s4 = inlined_call_operand.hbm [shape: f32[4,72], index: 4, kind: input, shape index: {}]   ;;  %s3501_s5 = inlined_call_operand.vmem [shape: f32[4,256], index: 5, kind: input, shape index: {}]   ;;  %s3502_s6 = inlined_call_operand.vmem [shape: f32[4,1], index: 6, kind: input, shape index: {}]   ;;  %s3503_s7 = inlined_call_operand.vmem [shape: f32[4,1], index: 7, kind: input, shape index: {}]   ;;  %s3504_s8 = inlined_call_operand.vmem [shape: f32[4,72], index: 8, kind: input, shape index: {}]   ;;  %s3505_s9 = inlined_call_operand.vmem [shape: f32[4,256], index: 9, kind: input, shape index: {}]   ;;  %s3506_s10 = inlined_call_operand.vmem [shape: f32[4,1], index: 10, kind: input, shape index: {}]   ;;  %s3507_s11 = inlined_call_operand.vmem [shape: f32[4,1], index: 11, kind: input, shape index: {}]   ;;  %s3508_s12 = inlined_call_operand.hbm [shape: f32[2,4,256], index: 12, kind: output, shape index: {}]  }
   0x1   :  { %18 = vsyncpa [#allocation8], 0 }
   0x2   :  { %19 = vsyncpa [#allocation6], 0  ;;  %s2490_s21 = smov [#allocation4]   ;;  %s2418_s25 = scalar_lea.hbm %s3496_s0, 256 }
   0x3   :  { %s25_s22 = sshll.u32 %s2490_s21, 4  ;;  %p2419_p0 = scmp.ne.s32.totalorder %s3496_s0, %s2418_s25  ;;  %s26_s22 = int_to_ptr.vmem [resolvable:$true] %s25_s22 }
   0x4   :  { %p2422_p1 = scmp.lt.u32.totalorder %s2418_s25, %s3496_s0 }
   0x6   :  { %p2424_p2 = pnand %p2422_p1, %p2419_p0 }
   0x8   :  { %2427 = shalt.err (!%p2424_p2)
}
   0x9   :  { %s2428_s30 = scalar_lea.vmem %s26_s22, 256  ;;  %p2433_p4 = scmp.lt.s32.totalorder %s26_s22, %s26_s22 }
   0xa   :  { %p2429_p3 = scmp.ne.s32.totalorder %s26_s22, %s2428_s30  ;;  %p2434_p5 = scmp.lt.s32.totalorder %s2428_s30, %s2428_s30 }
   0xc   :  { %p2435_p6 = por %p2434_p5, %p2433_p4 }
   0xe   :  { %p2436_p7 = pnand %p2435_p6, %p2429_p3 }
  0x10   :  { %2439 = shalt.err (!%p2436_p7)
}
  0x11   :  { %s2491_s13 = smov 128   ;;  %s2492_s14 = smov 8  }
  0x12   :  { %31 = dma.hbm_to_vmem [thread:$0]  %s3496_s0, 256, %s26_s22, [#allocation5], %s2491_s13, %s2491_s13, %s2492_s14  }
  0x13   :  { %s2493_s17 = smov [#allocation7]   ;;  %s2440_s21 = scalar_lea.hbm %s3500_s4, 64 }
  0x14   :  { %s44_s18 = sshll.u32 %s2493_s17, 4  ;;  %p2441_p8 = scmp.ne.s32.totalorder %s3500_s4, %s2440_s21  ;;  %s45_s18 = int_to_ptr.vmem [resolvable:$true] %s44_s18 }
  0x15   :  { %p2444_p9 = scmp.lt.u32.totalorder %s2440_s21, %s3500_s4 }
  0x17   :  { %p2446_p10 = pnand %p2444_p9, %p2441_p8 }
  0x19   :  { %2449 = shalt.err (!%p2446_p10)
}
  0x1a   :  { %s2450_s27 = scalar_lea.vmem %s45_s18, 64  ;;  %p2455_p12 = scmp.lt.s32.totalorder %s45_s18, %s45_s18 }
  0x1b   :  { %p2451_p11 = scmp.ne.s32.totalorder %s45_s18, %s2450_s27  ;;  %p2456_p13 = scmp.lt.s32.totalorder %s2450_s27, %s2450_s27 }
  0x1d   :  { %p2457_p0 = por %p2456_p13, %p2455_p12 }
  0x1f   :  { %p2458_p1 = pnand %p2457_p0, %p2451_p11 }
  0x21   :  { %2461 = shalt.err (!%p2458_p1)
}
  0x22   :  { %47 = dma.hbm_to_vmem [thread:$0]  %s3500_s4, 64, %s45_s18, [#allocation8]  }
  0x23   :  { %2484 = dma.done.wait [#allocation5], 256  }
  0x24   :  { %2485 = vsyncadd [#allocation5], 4294967040 }
  0x25   :  { %2486 = dma.done.wait [#allocation8], 64  }
  0x26   :  { %2487 = vsyncadd [#allocation8], 4294967232  ;;  %vm76_vm0 = vcmask 1043456   ;;  %v72_v0 = vld [vmem:[#allocation4] sm:$0xff]  ;;  %v143_v1 = vld [vmem:[#allocation4 + $0x8] sm:$0xff]  ;;  %v2494_v10 = vmov 0   ;;  %v87_v11 = vlaneseq }
  0x27   :  { %v74_v2 = vcombine.high %v72_v0, %v72_v0  ;;  %v77_v3 = vsel %vm76_vm0, %v72_v0, 0.0  ;;  %v145_v4 = vcombine.high %v143_v1, %v143_v1  ;;  %v147_v6 = vsel %vm76_vm0, %v143_v1, 0.0  ;;  %2190 = vset.pattern.permute.xlu1 %v2494_v10  ;;  %2191 = vset.pattern.permute.xlu0 %v2494_v10  ;;  %v546_v14 = vld [vmem:[%s3497_s1] ss:$8 sm:$0x3]  ;;  %s2495_s29 = smov 111  }
  0x28   :  { %v88_v12 = vshrl.u32 %v87_v11, 7  ;;  %v2496_v16 = vmov 839922192   ;;  %v2068_v38 = vld [vmem:[%s3497_s1 + $0x1] ss:$8 sm:$0x3] }
  0x29   :  { %v78_v5 = vsel %vm76_vm0, %v74_v2, 0.0  ;;  %v148_v7 = vsel %vm76_vm0, %v145_v4, 0.0  ;;  %v85_v17 = vunpack.c.l.s4 %v2496_v16  ;;  %s2497_s16 = smov 112   ;;  %v2062_v40 = vld [vmem:[%s3497_s1 + $0x2] ss:$8 sm:$0x3] }
  0x2a   :  { %v79_v8 = vadd.f32 %v78_v5, %v77_v3  ;;  %v149_v9 = vadd.f32 %v148_v7, %v147_v6  ;;  %v2603_v13 = vsub.s32 1, %v88_v12  ;;  %v120_v42 = vld [vmem:[%s3499_s3] sm:$0xf]  ;;  %s2498_s21 = smov 113   ;;  %v2642_v44 = vsub.s32 0, %v88_v12  ;;  %s2499_s28 = smov 127  }
  0x2b   :  { %v86_v18 = vunpack.c.0.s8 %v85_v17  ;;  %v2063_v43 = vld [vmem:[%s3497_s1 + $0x3] ss:$8 sm:$0x3]  ;;  %v215_v47 = vld [vmem:[%s3497_s1] ss:$8 sm:$0x3] }
  0x2c   :  { %80 = vadd.xlane.f32.xlu0 %v79_v8  ;;  %v555_v15 = vrot.slane %v546_v14, %v2603_v13  ;;  %v594_v39 = vrot.slane %v2068_v38, %v2603_v13  ;;  %v308_v41 = vrot.slane %v2062_v40, %v2603_v13  ;;  %v190_v45 = vld [vmem:[%s3499_s3] sm:$0xf]  ;;  %v350_v46 = vrot.slane %v2063_v43, %v2603_v13  ;;  %s2500_s27 = smov 1   ;;  %s2501_s30 = smov 15  }
  0x2d   :  { %v2610_v19 = vsub.s32 %v86_v18, %v88_v12  ;;  %v2069_v48 = vld [vmem:[%s3497_s1 + $0x2] ss:$8 sm:$0x3]  ;;  %v220_v50 = vrot.slane %v215_v47, %v2642_v44  ;;  %v224_v51 = vrot.slane %v215_v47, %v2603_v13  ;;  %v2061_v52 = vld [vmem:[%s3497_s1 + $0x1] ss:$8 sm:$0x3]  ;;  %v551_v55 = vrot.slane %v546_v14, %v2642_v44 }
  0x2e   :  { %v633_v49 = vrot.slane %v2069_v48, %v2603_v13  ;;  %v262_v53 = vrot.slane %v2061_v52, %v2642_v44  ;;  %v266_v54 = vrot.slane %v2061_v52, %v2603_v13  ;;  %v590_v56 = vrot.slane %v2068_v38, %v2642_v44  ;;  %v105_v4 = vld [vmem:[%s3498_s2] sm:$0xf]  ;;  %v2064_v12 = vld [vmem:[%s3497_s1 + $0x5] ss:$8 sm:$0x3]  ;;  %s2502_s18 = smov 16  }
  0x2f   :  { %v304_v57 = vrot.slane %v2062_v40, %v2642_v44  ;;  %v346_v58 = vrot.slane %v2063_v43, %v2642_v44  ;;  %v629_v59 = vrot.slane %v2069_v48, %v2642_v44  ;;  %v2070_v6 = vld [vmem:[%s3497_s1 + $0x3] ss:$8 sm:$0x3]  ;;  %v396_v16 = vrot.slane %v2064_v12, %v2603_v13  ;;  %v2071_v18 = vld [vmem:[%s3497_s1 + $0x5] ss:$8 sm:$0x3] }
  0x30   :  { %150 = vadd.xlane.f32.xlu0 %v149_v9  ;;  %v175_v9 = vld [vmem:[%s3498_s2] sm:$0xf]  ;;  %v672_v10 = vrot.slane %v2070_v6, %v2603_v13  ;;  %v668_v17 = vrot.slane %v2070_v6, %v2642_v44  ;;  %v2067_v40 = vld [vmem:[%s3497_s1 + $0x10] ss:$8 sm:$0x3]  ;;  %s2503_s2 = smov 17  }
  0x31   :  { %v512_v47 = vrot.slane %v2067_v40, %v2642_v44  ;;  %vm271_vm1 = vcmask 916480   ;;  %vm355_vm2 = vcmask 1039360   ;;  %vm229_vm3 = vcmask 908288  }
  0x32   :  { %vm372_vm4 = vcmask 7168   ;;  %vm330_vm5 = vcmask 121856   ;;  %vm313_vm6 = vcmask 924672   ;;  %vm288_vm7 = vcmask 130048  }
  0x33   :  { %vm246_vm8 = vcmask 138240   ;;  %vm2505_vm9 = vmmov 1   ;;  %vm896_vm11 = vcmask 588800  }
  0x34   :  { %vm3008_vm10 = vmpackc.low %vm2505_vm9, %vm76_vm0 }
  0x46   :  { %558 = vrot.lane.b32.xlu0 %v555_v15, %s2495_s29 }
  0x4a   :  { %597 = vrot.lane.b32.xlu0 %v594_v39, %s2497_s16 }
  0x4e   :  { %311 = vrot.lane.b32.xlu0 %v308_v41, %s2498_s21 }
  0x52   :  { %353 = vrot.lane.b32.xlu0 %v350_v46, %s2499_s28 }
  0x56   :  { %636 = vrot.lane.b32.xlu0 %v633_v49, %s2498_s21 }
  0xb9   :  { %v81_v20 = vpop.xlane.xlu0 %80 }
  0xba   :  { %v82_v21 = vmul.f32 0.00390625, %v81_v20 }
  0xbc   :  { %v90_v22 = vrot.slane %v82_v21, %v2610_v19  ;;  %v715_v21 = vrot.slane %v2071_v18, %v2603_v13 }
  0xbd   :  { %v151_v23 = vpop.xlane.xlu0 %150 }
  0xbe   :  { %v152_v24 = vmul.f32 0.00390625, %v151_v23  ;;  %v2613_v25 = vsub.f32 %v72_v0, %v90_v22  ;;  %v392_v22 = vrot.slane %v2064_v12, %v2642_v44  ;;  %v2065_v23 = vld [vmem:[%s3497_s1 + $0x6] ss:$8 sm:$0x3] }
  0xc0   :  { %v160_v26 = vrot.slane %v152_v24, %v2610_v19  ;;  %v93_v27 = vmul.f32 %v2613_v25, %v2613_v25 }
  0xc2   :  { %v2618_v28 = vsub.f32 %v143_v1, %v160_v26  ;;  %v95_v29 = vcombine.high %v93_v27, %v93_v27  ;;  %v97_v30 = vsel %vm76_vm0, %v93_v27, 0.0  ;;  %v436_v26 = vrot.slane %v2065_v23, %v2603_v13 }
  0xc3   :  { %v711_v27 = vrot.slane %v2071_v18, %v2642_v44 }
  0xc4   :  { %v98_v31 = vsel %vm76_vm0, %v95_v29, 0.0  ;;  %v163_v32 = vmul.f32 %v2618_v28, %v2618_v28  ;;  %v2066_v29 = vld [vmem:[%s3497_s1 + $0x7] ss:$8 sm:$0x3] }
  0xc5   :  { %v99_v33 = vadd.f32 %v98_v31, %v97_v30  ;;  %v476_v30 = vrot.slane %v2066_v29, %v2603_v13  ;;  %v432_v31 = vrot.slane %v2065_v23, %v2642_v44 }
  0xc6   :  { %v165_v34 = vcombine.high %v163_v32, %v163_v32  ;;  %v167_v35 = vsel %vm76_vm0, %v163_v32, 0.0  ;;  %v2072_v32 = vld [vmem:[%s3497_s1 + $0x6] ss:$8 sm:$0x3] }
  0xc7   :  { %100 = vadd.xlane.f32.xlu1 %v99_v33  ;;  %v750_v39 = vrot.slane %v2072_v32, %v2642_v44 }
  0xc8   :  { %v168_v36 = vsel %vm76_vm0, %v165_v34, 0.0  ;;  %v754_v34 = vrot.slane %v2072_v32, %v2603_v13 }
  0xc9   :  { %v169_v37 = vadd.f32 %v168_v36, %v167_v35  ;;  %v472_v35 = vrot.slane %v2066_v29, %v2642_v44  ;;  %v2073_v36 = vld [vmem:[%s3497_s1 + $0x7] ss:$8 sm:$0x3] }
  0xca   :  { %v793_v38 = vrot.slane %v2073_v36, %v2603_v13  ;;  %v789_v43 = vrot.slane %v2073_v36, %v2642_v44 }
  0xcb   :  { %170 = vadd.xlane.f32.xlu1 %v169_v37 }
  0xdc   :  { %123 = vperm.xlu1 %2190, %v120_v42   ;;  %v516_v42 = vrot.slane %v2067_v40, %v2603_v13 }
  0xe0   :  { %193 = vperm.xlu1 %2190, %v190_v45   ;;  %v2074_v45 = vld [vmem:[%s3497_s1 + $0x10] ss:$8 sm:$0x3] }
  0xe1   :  { %v832_v48 = vrot.slane %v2074_v45, %v2603_v13 }
  0xe4   :  { %225 = vrot.lane.b32.xlu1 %v220_v50, %s2495_s29 }
  0xe8   :  { %227 = vrot.lane.b32.xlu1 %v224_v51, %s2495_s29  ;;  %v828_v51 = vrot.slane %v2074_v45, %v2642_v44 }
  0xec   :  { %267 = vrot.lane.b32.xlu1 %v262_v53, %s2497_s16 }
  0xf0   :  { %269 = vrot.lane.b32.xlu1 %v266_v54, %s2497_s16 }
  0xf4   :  { %556 = vrot.lane.b32.xlu1 %v551_v55, %s2495_s29 }
  0xf8   :  { %595 = vrot.lane.b32.xlu1 %v590_v56, %s2497_s16 }
  0xfc   :  { %309 = vrot.lane.b32.xlu1 %v304_v57, %s2498_s21 }
 0x100   :  { %351 = vrot.lane.b32.xlu1 %v346_v58, %s2499_s28 }
 0x104   :  { %634 = vrot.lane.b32.xlu1 %v629_v59, %s2498_s21 }
 0x154   :  { %v101_v60 = vpop.xlane.xlu1 %100 }
 0x155   :  { %v102_v61 = vmul.f32 0.00390625, %v101_v60  ;;  %v2778_v60 = vpop.permute.xlu0 %558 }
 0x157   :  { %v103_v62 = vadd.f32 1e-05, %v102_v61 }
 0x158   :  { %v171_v63 = vpop.xlane.xlu1 %170 }
 0x159   :  { %2406 = vrsqrt.f32 %v103_v62  ;;  %v172_v0 = vmul.f32 0.00390625, %v171_v63  ;;  %v598_v61 = vpop.permute.xlu0 %597 }
 0x15b   :  { %v173_v1 = vadd.f32 1e-05, %v172_v0 }
 0x15c   :  { %v2678_v2 = vpop.permute.xlu1 %123 }
 0x15d   :  { %2408 = vrsqrt.f32 %v173_v1  ;;  %v2780_v62 = vpop.permute.xlu0 %311 }
 0x160   :  { %v2680_v3 = vpop.permute.xlu1 %193 }
 0x161   :  { %v2782_v63 = vpop.permute.xlu0 %353 }
 0x163   :  { %v2407_v5 = vpop.eup %2406 }
 0x164   :  { %v106_v7 = vmul.f32 %v2407_v5, %v105_v4  ;;  %v2688_v8 = vpop.permute.xlu1 %225 }
 0x165   :  { %v234_v52 = vmul.f32 0.0, %v2688_v8  ;;  %v2784_v0 = vpop.permute.xlu0 %636 }
 0x166   :  { %109 = vperm.xlu0 %2191, %v106_v7  }
 0x167   :  { %v2409_v11 = vpop.eup %2408 }
 0x168   :  { %v176_v14 = vmul.f32 %v2409_v11, %v175_v9  ;;  %v2697_v15 = vpop.permute.xlu1 %227 }
 0x16a   :  { %179 = vperm.xlu1 %2190, %v176_v14   ;;  %675 = vrot.lane.b32.xlu0 %v672_v10, %s2499_s28 }
 0x16c   :  { %v2705_v20 = vpop.permute.xlu1 %267 }
 0x16d   :  { %v276_v49 = vmul.f32 0.0, %v2705_v20 }
 0x16e   :  { %399 = vrot.lane.b32.xlu0 %v396_v16, %s2500_s27  ;;  %673 = vrot.lane.b32.xlu1 %v668_v17, %s2499_s28 }
 0x170   :  { %v2714_v24 = vpop.permute.xlu1 %269 }
 0x172   :  { %718 = vrot.lane.b32.xlu0 %v715_v21, %s2500_s27  ;;  %397 = vrot.lane.b32.xlu1 %v392_v22, %s2500_s27  ;;  %v131_v21 = vrot.slane %v2678_v2, %v2610_v19 }
 0x174   :  { %v2730_v33 = vpop.permute.xlu1 %556 }
 0x175   :  { %v564_v53 = vmul.f32 0.0, %v2730_v33 }
 0x176   :  { %439 = vrot.lane.b32.xlu0 %v436_v26, %s2501_s30  ;;  %716 = vrot.lane.b32.xlu1 %v711_v27, %s2500_s27 }
 0x177   :  { %v2192_v56 = vpack.i.bf16 %v564_v53, %v234_v52 }
 0x178   :  { %v2739_v37 = vpop.permute.xlu1 %595 }
 0x179   :  { %v603_v50 = vmul.f32 0.0, %v2739_v37 }
 0x17a   :  { %479 = vrot.lane.b32.xlu0 %v476_v30, %s2502_s18  ;;  %437 = vrot.lane.b32.xlu1 %v432_v31, %s2501_s30 }
 0x17b   :  { %v2197_v54 = vpack.i.bf16 %v603_v50, %v276_v49 }
 0x17c   :  { %v2748_v41 = vpop.permute.xlu1 %309 }
 0x17d   :  { %v318_v57 = vmul.f32 0.0, %v2748_v41 }
 0x17e   :  { %757 = vrot.lane.b32.xlu0 %v754_v34, %s2501_s30  ;;  %477 = vrot.lane.b32.xlu1 %v472_v35, %s2502_s18 }
 0x180   :  { %v2757_v46 = vpop.permute.xlu1 %351 }
 0x181   :  { %v360_v10 = vmul.f32 0.0, %v2757_v46 }
 0x182   :  { %796 = vrot.lane.b32.xlu0 %v793_v38, %s2502_s18  ;;  %755 = vrot.lane.b32.xlu1 %v750_v39, %s2501_s30 }
 0x184   :  { %v2770_v55 = vpop.permute.xlu1 %634 }
 0x185   :  { %v642_v58 = vmul.f32 0.0, %v2770_v55 }
 0x186   :  { %519 = vrot.lane.b32.xlu0 %v516_v42, %s2503_s2  ;;  %794 = vrot.lane.b32.xlu1 %v789_v43, %s2502_s18 }
 0x187   :  { %v2202_v59 = vpack.i.bf16 %v642_v58, %v318_v57  ;;  %v599_v57 = vsel %vm271_vm1, %v2739_v37, %v598_v61  ;;  %v356_v37 = vsel %vm355_vm2, %v2757_v46, %v2782_v63 }
 0x18a   :  { %517 = vrot.lane.b32.xlu1 %v512_v47, %s2503_s2  ;;  %835 = vrot.lane.b32.xlu0 %v832_v48, %s2503_s2  ;;  %v272_v48 = vsel %vm271_vm1, %v2705_v20, %v2714_v24 }
 0x18e   :  { %833 = vrot.lane.b32.xlu1 %v828_v51, %s2503_s2  ;;  %2198 = vrot.lane.b32.xlu0 %v2197_v54, %s2502_s18 }
 0x192   :  { %2193 = vrot.lane.b32.xlu1 %v2192_v56, %s2503_s2 }
 0x196   :  { %2203 = vrot.lane.b32.xlu1 %v2202_v59, %s2501_s30 }
 0x1e5   :  { %v110_v1 = vpop.permute.xlu0 %109 }
 0x1e6   :  { %v117_v6 = vrot.slane %v110_v1, %v2610_v19 }
 0x1e8   :  { %v119_v12 = vmul.f32 %v117_v6, %v2613_v25  ;;  %v201_v25 = vrot.slane %v2680_v3, %v2610_v19 }
 0x1e9   :  { %v180_v4 = vpop.permute.xlu1 %179  ;;  %v2786_v5 = vpop.permute.xlu0 %675 }
 0x1ea   :  { %v187_v14 = vrot.slane %v180_v4, %v2610_v19  ;;  %v133_v22 = vadd.f32 %v131_v21, %v119_v12 }
 0x1ec   :  { %v189_v23 = vmul.f32 %v187_v14, %v2618_v28  ;;  %v2809_v29 = vmax.f32 %v133_v22, 0.0  ;;  %v230_v14 = vsel %vm229_vm3, %v2688_v8, %v2697_v15 }
 0x1ed   :  { %v2789_v7 = vpop.permute.xlu1 %673  ;;  %v2791_v9 = vpop.permute.xlu0 %399 }
 0x1ee   :  { %v681_v11 = vmul.f32 0.0, %v2789_v7  ;;  %v203_v30 = vadd.f32 %v201_v25, %v189_v23  ;;  %v2817_v2 = vcombine.high %v2809_v29, %v2809_v29  ;;  %v2827_v19 = vsel %vm76_vm0, %v2809_v29, 0.0 }
 0x1ef   :  { %v277_v53 = vmul.f32 %v272_v48, %v2827_v19  ;;  %v235_v46 = vmul.f32 %v230_v14, %v2827_v19  ;;  %v560_v25 = vsel %vm229_vm3, %v2730_v33, %v2778_v60 }
 0x1f0   :  { %v2207_v18 = vpack.i.bf16 %v681_v11, %v360_v10  ;;  %v2819_v34 = vmax.f32 %v203_v30, 0.0  ;;  %v2831_v3 = vsel %vm76_vm0, %v2817_v2, 0.0  ;;  %v361_v11 = vmul.f32 %v356_v37, %v2827_v19 }
 0x1f1   :  { %v2797_v16 = vpop.permute.xlu1 %397  ;;  %v2799_v17 = vpop.permute.xlu0 %718  ;;  %v278_v47 = vmul.f32 %v2714_v24, %v2831_v3  ;;  %v362_v10 = vmul.f32 %v2782_v63, %v2831_v3  ;;  %v236_v12 = vmul.f32 %v2697_v15, %v2831_v3  ;;  %v677_v63 = vsel %vm355_vm2, %v2789_v7, %v2786_v5 }
 0x1f2   :  { %2208 = vrot.lane.b32.xlu0 %v2207_v18, %s2500_s27  ;;  %v2835_v36 = vcombine.high %v2819_v34, %v2819_v34  ;;  %v2839_v38 = vsel %vm76_vm0, %v2819_v34, 0.0  ;;  %v405_v56 = vmul.f32 %v2797_v16, %v2827_v19  ;;  %v320_v33 = vmul.f32 %v2780_v62, %v2831_v3 }
 0x1f3   :  { %v2232_v20 = vpack.i.bf16 %v278_v47, %v277_v53  ;;  %v604_v1 = vmul.f32 %v599_v57, %v2839_v38  ;;  %v2252_v21 = vpack.i.bf16 %v362_v10, %v361_v11  ;;  %v682_v23 = vmul.f32 %v677_v63, %v2839_v38 }
 0x1f4   :  { %v2856_v49 = vsel %vm76_vm0, %v2835_v36, 0.0  ;;  %v2227_v8 = vpack.i.bf16 %v236_v12, %v235_v46  ;;  %v565_v7 = vmul.f32 %v560_v25, %v2839_v38 }
 0x1f5   :  { %v717_v26 = vpop.permute.xlu1 %716  ;;  %v2805_v27 = vpop.permute.xlu0 %439  ;;  %v605_v24 = vmul.f32 %v598_v61, %v2856_v49  ;;  %v683_v18 = vmul.f32 %v2786_v5, %v2856_v49  ;;  %v566_v15 = vmul.f32 %v2778_v60, %v2856_v49  ;;  %v314_v60 = vsel %vm313_vm6, %v2748_v41, %v2780_v62 }
 0x1f6   :  { %v724_v51 = vmul.f32 %v717_v26, %v2839_v38  ;;  %v720_v22 = vsel %vm372_vm4, %v717_v26, %v2799_v17  ;;  %v319_v48 = vmul.f32 %v314_v60, %v2827_v19  ;;  %v638_v41 = vsel %vm313_vm6, %v2770_v55, %v2784_v0 }
 0x1f7   :  { %v2242_v6 = vpack.i.bf16 %v605_v24, %v604_v1  ;;  %v725_v30 = vmul.f32 %v720_v22, %v2856_v49  ;;  %v2262_v5 = vpack.i.bf16 %v683_v18, %v682_v23  ;;  %v401_v62 = vsel %vm372_vm4, %v2797_v16, %v2791_v9 }
 0x1f8   :  { %v2212_v59 = vpack.i.bf16 %v724_v51, %v405_v56  ;;  %v2247_v51 = vpack.i.bf16 %v320_v33, %v319_v48  ;;  %v643_v56 = vmul.f32 %v638_v41, %v2839_v38  ;;  %v407_v16 = vmul.f32 0.0, %v2791_v9 }
 0x1f9   :  { %v2811_v31 = vpop.permute.xlu1 %437  ;;  %v2813_v32 = vpop.permute.xlu0 %479 }
 0x1fa   :  { %v445_v42 = vmul.f32 %v2811_v31, %v2827_v19  ;;  %v441_v26 = vsel %vm330_vm5, %v2811_v31, %v2805_v27  ;;  %v447_v31 = vmul.f32 0.0, %v2805_v27 }
 0x1fd   :  { %v2821_v28 = vpop.permute.xlu1 %477  ;;  %v2823_v35 = vpop.permute.xlu0 %757 }
 0x1fe   :  { %v485_v4 = vmul.f32 %v2821_v28, %v2827_v19  ;;  %v765_v24 = vmul.f32 0.0, %v2823_v35 }
 0x201   :  { %v2841_v39 = vpop.permute.xlu1 %755  ;;  %v2843_v40 = vpop.permute.xlu0 %796 }
 0x202   :  { %v763_v43 = vmul.f32 %v2841_v39, %v2839_v38 }
 0x204   :  { %v2217_v45 = vpack.i.bf16 %v763_v43, %v445_v42  ;;  %v726_v42 = vmul.f32 0.0, %v2799_v17  ;;  %v2237_v43 = vpack.i.bf16 %v566_v15, %v565_v7  ;;  %v759_v17 = vsel %vm330_vm5, %v2841_v39, %v2823_v35 }
 0x205   :  { %v2858_v50 = vpop.permute.xlu0 %519  ;;  %v2864_v54 = vpop.permute.xlu1 %794  ;;  %v764_v53 = vmul.f32 %v759_v17, %v2856_v49 }
 0x206   :  { %v527_v52 = vmul.f32 0.0, %v2858_v50  ;;  %2218 = vrot.lane.b32.xlu0 %v2217_v45, %s2498_s21  ;;  %v802_v58 = vmul.f32 %v2864_v54, %v2839_v38  ;;  %v446_v45 = vmul.f32 %v441_v26, %v2831_v3  ;;  %v2272_v47 = vpack.i.bf16 %v726_v42, %v725_v30 }
 0x207   :  { %v2287_v57 = vpack.i.bf16 %v765_v24, %v764_v53 }
 0x208   :  { %535 = vrot.lane.b32.xlu1 %v527_v52, %s2495_s29  ;;  %v2222_v61 = vpack.i.bf16 %v802_v58, %v485_v4  ;;  %v644_v52 = vmul.f32 %v2784_v0, %v2856_v49  ;;  %v2277_v27 = vpack.i.bf16 %v447_v31, %v446_v45  ;;  %v481_v0 = vsel %vm288_vm7, %v2821_v28, %v2813_v32 }
 0x209   :  { %v518_v39 = vpop.permute.xlu1 %517  ;;  %v836_v35 = vpop.permute.xlu0 %835  ;;  %v487_v28 = vmul.f32 0.0, %v2813_v32 }
 0x20a   :  { %2233 = vrot.lane.b32.xlu0 %v2232_v20, %s2502_s18  ;;  %v406_v20 = vmul.f32 %v401_v62, %v2831_v3  ;;  %v2257_v55 = vpack.i.bf16 %v644_v52, %v643_v56  ;;  %v521_v58 = vsel %vm246_vm8, %v518_v39, %v2858_v50  ;;  %v525_v11 = vmul.f32 %v518_v39, %v2827_v19 }
 0x20b   :  { %v526_v9 = vmul.f32 %v521_v58, %v2831_v3  ;;  %v843_v12 = vmul.f32 0.0, %v836_v35 }
 0x20c   :  { %2213 = vrot.lane.b32.xlu1 %v2212_v59, %s2499_s28  ;;  %v486_v59 = vmul.f32 %v481_v0, %v2831_v3  ;;  %v2267_v4 = vpack.i.bf16 %v407_v16, %v406_v20 }
 0x20d   :  { %v834_v1 = vpop.permute.xlu1 %833 }
 0x20e   :  { %2243 = vrot.lane.b32.xlu0 %v2242_v6, %s2502_s18  ;;  %v798_v6 = vsel %vm288_vm7, %v2864_v54, %v2843_v40  ;;  %v837_v10 = vsel %vm246_vm8, %v834_v1, %v836_v35  ;;  %v2282_v37 = vpack.i.bf16 %v487_v28, %v486_v59  ;;  %v804_v54 = vmul.f32 0.0, %v2843_v40  ;;  %v2199_v40 = vpop.permute.xlu0 %2198 }
 0x20f   :  { %v803_v50 = vmul.f32 %v798_v6, %v2856_v49  ;;  %v842_v32 = vmul.f32 %v837_v10, %v2856_v49  ;;  %v841_v14 = vmul.f32 %v834_v1, %v2839_v38  ;;  %v2200_v30 = vunpack.i.l.bf16 %v2199_v40 }
 0x210   :  { %2223 = vrot.lane.b32.xlu1 %v2222_v61, %s2497_s16  ;;  %v2504_v61 = vmov 0.0   ;;  %v2201_v62 = vunpack.i.h.bf16 %v2199_v40 }
 0x211   :  { %964 = vmatprep.mubr.f32.mxu0 %v2504_v61  ;;  %1035 = vmatprep.mubr.f32.mxu1 %v2504_v61  ;;  %v2292_v3 = vpack.i.bf16 %v804_v54, %v803_v50  ;;  %v2194_v18 = vpop.permute.xlu1 %2193 }
 0x212   :  { %2253 = vrot.lane.b32.xlu0 %v2252_v21, %s2500_s27  ;;  %v2195_v7 = vunpack.i.l.bf16 %v2194_v18  ;;  %v2196_v41 = vunpack.i.h.bf16 %v2194_v18 }
 0x214   :  { %2228 = vrot.lane.b32.xlu1 %v2227_v8, %s2503_s2 }
 0x215   :  { %v2974_v49 = vpop.permute.xlu1 %2203 }
 0x216   :  { %2263 = vrot.lane.b32.xlu0 %v2262_v5, %s2500_s27  ;;  %v2205_v35 = vunpack.i.l.bf16 %v2974_v49  ;;  %v2206_v18 = vunpack.i.h.bf16 %v2974_v49 }
 0x218   :  { %2238 = vrot.lane.b32.xlu1 %v2237_v43, %s2503_s2 }
 0x21a   :  { %2273 = vrot.lane.b32.xlu0 %v2272_v47, %s2499_s28 }
 0x21c   :  { %2248 = vrot.lane.b32.xlu1 %v2247_v51, %s2501_s30 }
 0x21e   :  { %2278 = vrot.lane.b32.xlu0 %v2277_v27, %s2498_s21 }
 0x220   :  { %2258 = vrot.lane.b32.xlu1 %v2257_v55, %s2501_s30 }
 0x222   :  { %2288 = vrot.lane.b32.xlu0 %v2287_v57, %s2498_s21 }
 0x224   :  { %2268 = vrot.lane.b32.xlu1 %v2267_v4, %s2499_s28 }
 0x226   :  { %533 = vrot.lane.b32.xlu0 %v526_v9, %s2495_s29 }
 0x228   :  { %2283 = vrot.lane.b32.xlu1 %v2282_v37, %s2497_s16 }
 0x22a   :  { %849 = vrot.lane.b32.xlu0 %v842_v32, %s2495_s29 }
 0x22c   :  { %2293 = vrot.lane.b32.xlu1 %v2292_v3, %s2497_s16 }
 0x22e   :  { %531 = vrot.lane.b32.xlu0 %v525_v11, %s2495_s29 }
 0x230   :  { %851 = vrot.lane.b32.xlu1 %v843_v12, %s2495_s29 }
 0x234   :  { %847 = vrot.lane.b32.xlu1 %v841_v14, %s2495_s29 }
 0x264   :  { %v2972_v21 = vpop.permute.xlu0 %2208 }
 0x265   :  { %v2210_v57 = vunpack.i.l.bf16 %v2972_v21 }
 0x278   :  { %v2976_v46 = vpop.permute.xlu0 %2218 }
 0x27a   :  { %v2978_v19 = vpop.permute.xlu1 %535 }
 0x27c   :  { %v2234_v63 = vpop.permute.xlu0 %2233 }
 0x27d   :  { %v2236_v15 = vunpack.i.h.bf16 %v2234_v63  ;;  %v2235_v38 = vunpack.i.l.bf16 %v2234_v63  ;;  %v2211_v63 = vunpack.i.h.bf16 %v2972_v21 }
 0x27e   :  { %v2980_v22 = vpop.permute.xlu1 %2213 }
 0x27f   :  { %v290_v33 = vsel %vm288_vm7, %v2235_v38, %v2236_v15  ;;  %v289_v60 = vsel %vm288_vm7, %v2200_v30, %v2235_v38 }
 0x280   :  { %v2244_v23 = vpop.permute.xlu0 %2243 }
 0x281   :  { %v2246_v45 = vunpack.i.h.bf16 %v2244_v23  ;;  %v2245_v47 = vunpack.i.l.bf16 %v2244_v23 }
 0x282   :  { %v2982_v8 = vpop.permute.xlu1 %2223 }
 0x283   :  { %v616_v55 = vsel %vm288_vm7, %v2245_v47, %v2246_v45  ;;  %v615_v16 = vsel %vm288_vm7, %v2201_v62, %v2245_v47  ;;  %v2220_v62 = vunpack.i.l.bf16 %v2976_v46 }
 0x284   :  { %v2254_v25 = vpop.permute.xlu0 %2253 }
 0x285   :  { %v2256_v27 = vunpack.i.h.bf16 %v2254_v25  ;;  %v2255_v56 = vunpack.i.l.bf16 %v2254_v25 }
 0x286   :  { %v2229_v5 = vpop.permute.xlu1 %2228 }
 0x287   :  { %v2231_v26 = vunpack.i.h.bf16 %v2229_v5  ;;  %v2230_v42 = vunpack.i.l.bf16 %v2229_v5  ;;  %v374_v50 = vsel %vm372_vm4, %v2255_v56, %v2256_v27  ;;  %v373_v37 = vsel %vm372_vm4, %v2210_v57, %v2255_v56 }
 0x288   :  { %v2264_v43 = vpop.permute.xlu0 %2263 }
 0x289   :  { %v248_v48 = vsel %vm246_vm8, %v2230_v42, %v2231_v26  ;;  %v247_v17 = vsel %vm246_vm8, %v2195_v7, %v2230_v42  ;;  %v2266_v28 = vunpack.i.h.bf16 %v2264_v43  ;;  %v2265_v9 = vunpack.i.l.bf16 %v2264_v43 }
 0x28a   :  { %v2239_v31 = vpop.permute.xlu1 %2238  ;;  %v2101_v51 = vpack.c.bf16 %v290_v33, %v248_v48  ;;  %v2103_v52 = vpack.c.bf16 %v289_v60, %v247_v17  ;;  %v2216_v42 = vunpack.i.h.bf16 %v2980_v22  ;;  %v2215_v33 = vunpack.i.l.bf16 %v2980_v22 }
 0x28b   :  { %v2241_v53 = vunpack.i.h.bf16 %v2239_v31  ;;  %v2240_v39 = vunpack.i.l.bf16 %v2239_v31  ;;  %v694_v25 = vsel %vm372_vm4, %v2265_v9, %v2266_v28  ;;  %v693_v26 = vsel %vm372_vm4, %v2211_v63, %v2265_v9 }
 0x28c   :  { %v2274_v20 = vpop.permute.xlu0 %2273  ;;  %2102 = vmatprep.subr.bf16.mxu0 %v2101_v51 }
 0x28d   :  { %2104 = vmatpush1.bf16.msra.mxu0 %v2103_v52  ;;  %v577_v24 = vsel %vm246_vm8, %v2240_v39, %v2241_v53  ;;  %v576_v0 = vsel %vm246_vm8, %v2196_v41, %v2240_v39  ;;  %v2276_v54 = vunpack.i.h.bf16 %v2274_v20  ;;  %v2275_v32 = vunpack.i.l.bf16 %v2274_v20 }
 0x28e   :  { %v2249_v58 = vpop.permute.xlu1 %2248  ;;  %v2119_v59 = vpack.c.bf16 %v616_v55, %v577_v24  ;;  %v2121_v1 = vpack.c.bf16 %v615_v16, %v576_v0 }
 0x28f   :  { %v2251_v4 = vunpack.i.h.bf16 %v2249_v58  ;;  %v2250_v6 = vunpack.i.l.bf16 %v2249_v58  ;;  %v737_v30 = vsel %vm355_vm2, %v2275_v32, %v2276_v54  ;;  %v736_v48 = vsel %vm355_vm2, %v2216_v42, %v2275_v32 }
 0x290   :  { %v2279_v10 = vpop.permute.xlu0 %2278  ;;  %2120 = vmatprep.subr.bf16.mxu1 %v2119_v59  ;;  %v2127_v17 = vpack.c.bf16 %v737_v30, %v2835_v36  ;;  %v2225_v36 = vunpack.i.l.bf16 %v2982_v8  ;;  %v2130_v56 = vpack.c.bf16 %v736_v48, %v2819_v34  ;;  %v1139_v48 = vld [vmem:[%s3497_s1] ss:$8 sm:$0x3] }
 0x291   :  { %2122 = vmatpush1.bf16.msra.mxu1 %v2121_v1  ;;  %v332_v3 = vsel %vm330_vm5, %v2250_v6, %v2251_v4  ;;  %v331_v11 = vsel %vm330_vm5, %v2205_v35, %v2250_v6  ;;  %v2281_v31 = vunpack.i.h.bf16 %v2279_v10  ;;  %v2280_v51 = vunpack.i.l.bf16 %v2279_v10 }
 0x292   :  { %v2259_v12 = vpop.permute.xlu1 %2258  ;;  %v2105_v14 = vpack.c.bf16 %v374_v50, %v332_v3  ;;  %v2107_v40 = vpack.c.bf16 %v373_v37, %v331_v11  ;;  %v2221_v35 = vunpack.i.h.bf16 %v2976_v46  ;;  %v2226_v4 = vunpack.i.h.bf16 %v2982_v8  ;;  %v859_v11 = vld [vmem:[#allocation7] sm:$0xf] }
 0x293   :  { %v2261_v23 = vunpack.i.h.bf16 %v2259_v12  ;;  %v2260_v15 = vunpack.i.l.bf16 %v2259_v12  ;;  %v457_v34 = vsel %vm313_vm6, %v2220_v62, %v2280_v51 }
 0x294   :  { %v2289_v38 = vpop.permute.xlu0 %2288  ;;  %2106 = vmatprep.subr.bf16.mxu0 %v2105_v14 }
 0x295   :  { %2108 = vmatpush1.bf16.msra.mxu0 %v2107_v40  ;;  %v655_v5 = vsel %vm330_vm5, %v2260_v15, %v2261_v23  ;;  %v654_v7 = vsel %vm330_vm5, %v2206_v18, %v2260_v15  ;;  %v2291_v55 = vunpack.i.h.bf16 %v2289_v38  ;;  %v2290_v0 = vunpack.i.l.bf16 %v2289_v38  ;;  %v1042_v18 = vld [vmem:[%s3501_s5] sm:$0xff] }
 0x296   :  { %v2269_v49 = vpop.permute.xlu1 %2268  ;;  %v2123_v43 = vpack.c.bf16 %v694_v25, %v655_v5  ;;  %v2125_v21 = vpack.c.bf16 %v693_v26, %v654_v7  ;;  %v1044_v63 = vcombine.high %v1042_v18, %v1042_v18 }
 0x297   :  { %v2271_v60 = vunpack.i.h.bf16 %v2269_v49  ;;  %v2270_v45 = vunpack.i.l.bf16 %v2269_v49  ;;  %v776_v9 = vsel %vm313_vm6, %v2290_v0, %v2291_v55  ;;  %v775_v54 = vsel %vm313_vm6, %v2221_v35, %v2290_v0 }
 0x298   :  { %v534_v52 = vpop.permute.xlu0 %533  ;;  %2124 = vmatprep.subr.bf16.mxu1 %v2123_v43 }
 0x299   :  { %v417_v41 = vsel %vm355_vm2, %v2215_v33, %v2270_v45  ;;  %v418_v22 = vsel %vm355_vm2, %v2270_v45, %v2271_v60  ;;  %2126 = vmatpush1.bf16.msra.mxu1 %v2125_v21  ;;  %v538_v50 = vsel %vm229_vm3, %v534_v52, %v2978_v19  ;;  %v1075_v60 = vld [vmem:[%s3503_s7] sm:$0xf] }
 0x29a   :  { %v2109_v53 = vpack.c.bf16 %v418_v22, %v2817_v2  ;;  %v2112_v39 = vpack.c.bf16 %v417_v41, %v2809_v29  ;;  %v2284_v27 = vpop.permute.xlu1 %2283  ;;  %2129 = vmatprep.subr.msk.bf16.mxu1 %vm3008_vm10, %v2127_v17  ;;  %v458_v2 = vsel %vm313_vm6, %v2280_v51, %v2281_v31  ;;  %v1122_v45 = vld [vmem:[%s3503_s7] sm:$0xf]  ;;  %v1148_v17 = vrot.slane %v1139_v48, %v2603_v13 }
 0x29b   :  { %v2286_v20 = vunpack.i.h.bf16 %v2284_v27  ;;  %v2285_v24 = vunpack.i.l.bf16 %v2284_v27  ;;  %v2077_v31 = vld [vmem:[%s3497_s1 + $0x1] ss:$8 sm:$0x3] }
 0x29c   :  { %v850_v16 = vpop.permute.xlu0 %849  ;;  %2111 = vmatprep.subr.msk.bf16.mxu0 %vm3008_vm10, %v2109_v53  ;;  %v1187_v51 = vrot.slane %v2077_v31, %v2603_v13  ;;  %v2084_v22 = vld [vmem:[%s3497_s1 + $0x1] ss:$8 sm:$0x3] }
 0x29d   :  { %2114 = vmatpush1.bf16.msk.msra.mxu0 %vm3008_vm10, %v2112_v39  ;;  %2132 = vmatpush1.bf16.msk.msra.mxu1 %vm3008_vm10, %v2130_v56  ;;  %v498_v29 = vsel %vm271_vm1, %v2285_v24, %v2286_v20  ;;  %v497_v57 = vsel %vm271_vm1, %v2225_v36, %v2285_v24  ;;  %v1503_v62 = vrot.slane %v2084_v22, %v2603_v13 }
 0x29e   :  { %v2294_v58 = vpop.permute.xlu1 %2293  ;;  %v2115_v59 = vpack.c.bf16 %v498_v29, %v458_v2  ;;  %v2117_v1 = vpack.c.bf16 %v497_v57, %v457_v34 }
 0x29f   :  { %v2296_v6 = vunpack.i.h.bf16 %v2294_v58  ;;  %v2295_v28 = vunpack.i.l.bf16 %v2294_v58 }
 0x2a0   :  { %2116 = vmatprep.subr.bf16.mxu0 %v2115_v59  ;;  %v532_v10 = vpop.permute.xlu0 %531 }
 0x2a1   :  { %2118 = vmatpush1.bf16.msra.mxu0 %v2117_v1  ;;  %v815_v37 = vsel %vm271_vm1, %v2295_v28, %v2296_v6  ;;  %v814_v32 = vsel %vm271_vm1, %v2226_v4, %v2295_v28  ;;  %v537_v12 = vsel %vm229_vm3, %v532_v10, %v534_v52  ;;  %v1455_v52 = vld [vmem:[%s3497_s1] ss:$8 sm:$0x3]  ;;  %v2078_v4 = vld [vmem:[%s3497_s1 + $0x2] ss:$8 sm:$0x3] }
 0x2a2   :  { %v852_v3 = vpop.permute.xlu1 %851  ;;  %916 = vmatprep.subr.mxu0 %v538_v50  ;;  %v2133_v46 = vpack.c.bf16 %v815_v37, %v776_v9  ;;  %v2135_v8 = vpack.c.bf16 %v814_v32, %v775_v54  ;;  %v1464_v41 = vrot.slane %v1455_v52, %v2603_v13  ;;  %v1226_v6 = vrot.slane %v2078_v4, %v2603_v13  ;;  %v2079_v28 = vld [vmem:[%s3497_s1 + $0x3] ss:$8 sm:$0x3]  ;;  %v2085_v50 = vld [vmem:[%s3497_s1 + $0x2] ss:$8 sm:$0x3] }
 0x2a3   :  { %v854_v14 = vsel %vm229_vm3, %v850_v16, %v852_v3  ;;  %v1144_v9 = vrot.slane %v1139_v48, %v2642_v44  ;;  %v1265_v10 = vrot.slane %v2079_v28, %v2603_v13  ;;  %v1542_v37 = vrot.slane %v2085_v50, %v2603_v13  ;;  %v2086_v54 = vld [vmem:[%s3497_s1 + $0x3] ss:$8 sm:$0x3] }
 0x2a4   :  { %2134 = vmatprep.subr.bf16.mxu1 %v2133_v46  ;;  %v1183_v32 = vrot.slane %v2077_v31, %v2642_v44  ;;  %v1581_v3 = vrot.slane %v2086_v54, %v2603_v13  ;;  %v1460_v46 = vrot.slane %v1455_v52, %v2642_v44 }
 0x2a5   :  { %917 = vmatpush1.msra.mxu0 %v537_v12  ;;  %2136 = vmatpush1.bf16.msra.mxu1 %v2135_v8  ;;  %v1499_v8 = vrot.slane %v2084_v22, %v2642_v44  ;;  %v1261_v12 = vrot.slane %v2079_v28, %v2642_v44 }
 0x2a6   :  { %v848_v19 = vpop.permute.xlu1 %847  ;;  %2075 = vmatmul.mubr.msk.f32.vlgmr.msra.gmra.mrb[0].mxu0 %vm896_vm11, %v859_v11  ;;  %987 = vmatprep.subr.mxu1 %v854_v14  ;;  %v1538_v14 = vrot.slane %v2085_v50, %v2642_v44 }
 0x2a7   :  { %v853_v40 = vsel %vm229_vm3, %v848_v19, %v850_v16  ;;  %1872 = vmatprep.mubr.f32.mxu0 %v2504_v61  ;;  %v1577_v19 = vrot.slane %v2086_v54, %v2642_v44 }
 0x2a9   :  { %988 = vmatpush1.msra.mxu1 %v853_v40 }
 0x2aa   :  { %2076 = vmatmul.mubr.msk.f32.vlgmr.msra.gmra.mrb[0].mxu1 %vm896_vm11, %v859_v11  ;;  %v1222_v11 = vrot.slane %v2078_v4, %v2642_v44 }
 0x2ab   :  { %1943 = vmatprep.mubr.f32.mxu1 %v2504_v61 }
 0x379   :  { %v966_v23 = vpop.f32.mrb[0].mxu0 }
 0x37a   :  { %v1046_v15 = vadd.f32 %v1042_v18, %v966_v23  ;;  %v968_v38 = vpop.f32.mrb[1].mxu0 }
 0x37b   :  { %v1047_v25 = vadd.f32 %v1044_v63, %v968_v38 }
 0x37c   :  { %v1048_v30 = vsel %vm76_vm0, %v1046_v15, 0.0 }
 0x37d   :  { %v1037_v5 = vpop.f32.mrb[0].mxu1  ;;  %v1049_v7 = vsel %vm76_vm0, %v1047_v25, 0.0 }
 0x37e   :  { %v1093_v26 = vadd.f32 %v1042_v18, %v1037_v5  ;;  %v1039_v42 = vpop.f32.mrb[1].mxu1  ;;  %v1050_v49 = vadd.f32 %v1049_v7, %v1048_v30  ;;  %v1066_v30 = vld [vmem:[%s3502_s6] sm:$0xf] }
 0x37f   :  { %v1094_v43 = vadd.f32 %v1044_v63, %v1039_v42 }
 0x380   :  { %1051 = vadd.xlane.f32.xlu0 %v1050_v49  ;;  %v1095_v61 = vsel %vm76_vm0, %v1093_v26, 0.0  ;;  %v1113_v49 = vld [vmem:[%s3502_s6] sm:$0xf] }
 0x381   :  { %v1096_v21 = vsel %vm76_vm0, %v1094_v43, 0.0 }
 0x382   :  { %v1097_v33 = vadd.f32 %v1096_v21, %v1095_v61  ;;  %v2087_v21 = vld [vmem:[%s3497_s1 + $0x5] ss:$8 sm:$0x3] }
 0x383   :  { %v1620_v52 = vrot.slane %v2087_v21, %v2642_v44 }
 0x384   :  { %1098 = vadd.xlane.f32.xlu1 %v1097_v33 }
 0x395   :  { %1078 = vperm.xlu1 %2190, %v1075_v60  }
 0x399   :  { %1125 = vperm.xlu1 %2190, %v1122_v45   ;;  %v1624_v45 = vrot.slane %v2087_v21, %v2603_v13 }
 0x39d   :  { %1151 = vrot.lane.b32.xlu1 %v1148_v17, %s2495_s29  ;;  %v2081_v17 = vld [vmem:[%s3497_s1 + $0x6] ss:$8 sm:$0x3] }
 0x3a1   :  { %1190 = vrot.lane.b32.xlu1 %v1187_v51, %s2497_s16  ;;  %v1347_v51 = vrot.slane %v2081_v17, %v2603_v13 }
 0x3a5   :  { %1467 = vrot.lane.b32.xlu1 %v1464_v41, %s2495_s29  ;;  %v2082_v41 = vld [vmem:[%s3497_s1 + $0x7] ss:$8 sm:$0x3] }
 0x3a6   :  { %v1386_v22 = vrot.slane %v2082_v41, %v2603_v13 }
 0x3a9   :  { %1506 = vrot.lane.b32.xlu1 %v1503_v62, %s2497_s16  ;;  %v1343_v62 = vrot.slane %v2081_v17, %v2642_v44 }
 0x3ad   :  { %1229 = vrot.lane.b32.xlu1 %v1226_v6, %s2498_s21 }
 0x3b1   :  { %1268 = vrot.lane.b32.xlu1 %v1265_v10, %s2499_s28 }
 0x3b5   :  { %1545 = vrot.lane.b32.xlu1 %v1542_v37, %s2498_s21 }
 0x3b9   :  { %1584 = vrot.lane.b32.xlu1 %v1581_v3, %s2499_s28 }
 0x40d   :  { %v1052_v53 = vpop.xlane.xlu0 %1051 }
 0x40e   :  { %v1053_v39 = vmul.f32 0.00390625, %v1052_v53  ;;  %v2088_v53 = vld [vmem:[%s3497_s1 + $0x6] ss:$8 sm:$0x3] }
 0x410   :  { %v3081_v27 = vsub.f32 %v1046_v15, %v1053_v39  ;;  %v3083_v36 = vsub.f32 %v1047_v25, %v1053_v39 }
 0x411   :  { %v1099_v56 = vpop.xlane.xlu1 %1098 }
 0x412   :  { %v1100_v20 = vmul.f32 0.00390625, %v1099_v56  ;;  %v1056_v24 = vmul.f32 %v3081_v27, %v3081_v27  ;;  %v1057_v55 = vmul.f32 %v3083_v36, %v3083_v36  ;;  %v1663_v56 = vrot.slane %v2088_v53, %v2603_v13 }
 0x414   :  { %v3089_v0 = vsub.f32 %v1093_v26, %v1100_v20  ;;  %v3091_v16 = vsub.f32 %v1094_v43, %v1100_v20  ;;  %v1058_v2 = vsel %vm76_vm0, %v1056_v24, 0.0  ;;  %v1059_v29 = vsel %vm76_vm0, %v1057_v55, 0.0  ;;  %v2080_v26 = vld [vmem:[%s3497_s1 + $0x5] ss:$8 sm:$0x3] }
 0x415   :  { %v1060_v34 = vadd.f32 %v1059_v29, %v1058_v2  ;;  %v1308_v43 = vrot.slane %v2080_v26, %v2603_v13  ;;  %v1304_v48 = vrot.slane %v2080_v26, %v2642_v44  ;;  %v1382_v20 = vrot.slane %v2082_v41, %v2642_v44  ;;  %v2089_v24 = vld [vmem:[%s3497_s1 + $0x7] ss:$8 sm:$0x3] }
 0x416   :  { %v1103_v57 = vmul.f32 %v3089_v0, %v3089_v0  ;;  %v1104_v58 = vmul.f32 %v3091_v16, %v3091_v16  ;;  %v1702_v2 = vrot.slane %v2089_v24, %v2603_v13  ;;  %v1659_v29 = vrot.slane %v2088_v53, %v2642_v44 }
 0x417   :  { %1061 = vadd.xlane.f32.xlu0 %v1060_v34  ;;  %v2083_v34 = vld [vmem:[%s3497_s1 + $0x10] ss:$8 sm:$0x3] }
 0x418   :  { %v1105_v59 = vsel %vm76_vm0, %v1103_v57, 0.0  ;;  %v1106_v1 = vsel %vm76_vm0, %v1104_v58, 0.0  ;;  %v1425_v57 = vrot.slane %v2083_v34, %v2603_v13  ;;  %v1698_v58 = vrot.slane %v2089_v24, %v2642_v44 }
 0x419   :  { %v1107_v35 = vadd.f32 %v1106_v1, %v1105_v59  ;;  %v2090_v59 = vld [vmem:[%s3497_s1 + $0x10] ss:$8 sm:$0x3] }
 0x41a   :  { %v1741_v4 = vrot.slane %v2090_v59, %v2603_v13 }
 0x41b   :  { %1108 = vadd.xlane.f32.xlu0 %v1107_v35  ;;  %v1421_v35 = vrot.slane %v2083_v34, %v2642_v44 }
 0x431   :  { %1149 = vrot.lane.b32.xlu0 %v1144_v9, %s2495_s29  ;;  %v1737_v9 = vrot.slane %v2090_v59, %v2642_v44 }
 0x435   :  { %1188 = vrot.lane.b32.xlu0 %v1183_v32, %s2497_s16 }
 0x439   :  { %1465 = vrot.lane.b32.xlu0 %v1460_v46, %s2495_s29 }
 0x43d   :  { %1504 = vrot.lane.b32.xlu0 %v1499_v8, %s2497_s16 }
 0x441   :  { %1227 = vrot.lane.b32.xlu0 %v1222_v11, %s2498_s21 }
 0x445   :  { %1266 = vrot.lane.b32.xlu0 %v1261_v12, %s2499_s28  ;;  %v1079_v12 = vpop.permute.xlu1 %1078 }
 0x449   :  { %1543 = vrot.lane.b32.xlu0 %v1538_v14, %s2498_s21  ;;  %v1126_v14 = vpop.permute.xlu1 %1125 }
 0x44d   :  { %1582 = vrot.lane.b32.xlu0 %v1577_v19, %s2499_s28  ;;  %v3227_v19 = vpop.permute.xlu1 %1151 }
 0x4a4   :  { %v1062_v40 = vpop.xlane.xlu0 %1061 }
 0x4a5   :  { %v1063_v18 = vmul.f32 0.00390625, %v1062_v40  ;;  %v1191_v40 = vpop.permute.xlu1 %1190 }
 0x4a7   :  { %v1064_v63 = vadd.f32 1e-05, %v1063_v18 }
 0x4a8   :  { %v1109_v23 = vpop.xlane.xlu0 %1108 }
 0x4a9   :  { %2410 = vrsqrt.f32 %v1064_v63  ;;  %v1110_v15 = vmul.f32 0.00390625, %v1109_v23  ;;  %v3229_v18 = vpop.permute.xlu1 %1467 }
 0x4ab   :  { %v1111_v38 = vadd.f32 1e-05, %v1110_v15 }
 0x4ac   :  { %v3137_v25 = vpop.permute.xlu0 %1149 }
 0x4ad   :  { %2412 = vrsqrt.f32 %v1111_v38  ;;  %v1157_v10 = vmul.f32 0.0, %v3137_v25  ;;  %v1507_v63 = vpop.permute.xlu1 %1506 }
 0x4b0   :  { %v3142_v5 = vpop.permute.xlu0 %1188 }
 0x4b1   :  { %v1196_v6 = vmul.f32 0.0, %v3142_v5  ;;  %v3231_v23 = vpop.permute.xlu1 %1229 }
 0x4b3   :  { %v2411_v7 = vpop.eup %2410 }
 0x4b4   :  { %v1067_v42 = vmul.f32 %v2411_v7, %v1066_v30  ;;  %v3154_v33 = vpop.permute.xlu0 %1465 }
 0x4b5   :  { %v1473_v37 = vmul.f32 0.0, %v3154_v33  ;;  %v1269_v15 = vpop.permute.xlu1 %1268 }
 0x4b6   :  { %1070 = vperm.xlu1 %2190, %v1067_v42  }
 0x4b7   :  { %v2413_v61 = vpop.eup %2412  ;;  %v2297_v3 = vpack.i.bf16 %v1473_v37, %v1157_v10 }
 0x4b8   :  { %v1114_v60 = vmul.f32 %v2413_v61, %v1113_v49  ;;  %v3162_v31 = vpop.permute.xlu0 %1504 }
 0x4b9   :  { %v1512_v28 = vmul.f32 0.0, %v3162_v31  ;;  %v3233_v38 = vpop.permute.xlu1 %1545 }
 0x4ba   :  { %1117 = vperm.xlu0 %2191, %v1114_v60   ;;  %1311 = vrot.lane.b32.xlu1 %v1308_v43, %s2500_s27 }
 0x4bb   :  { %v2302_v54 = vpack.i.bf16 %v1512_v28, %v1196_v6 }
 0x4bc   :  { %v3178_v39 = vpop.permute.xlu0 %1227 }
 0x4bd   :  { %v1235_v44 = vmul.f32 0.0, %v3178_v39  ;;  %v1585_v30 = vpop.permute.xlu1 %1584 }
 0x4be   :  { %1627 = vrot.lane.b32.xlu1 %v1624_v45, %s2500_s27  ;;  %1309 = vrot.lane.b32.xlu0 %v1304_v48, %s2500_s27 }
 0x4c0   :  { %v3187_v55 = vpop.permute.xlu0 %1266 }
 0x4c1   :  { %v1274_v32 = vmul.f32 0.0, %v3187_v55 }
 0x4c2   :  { %1350 = vrot.lane.b32.xlu1 %v1347_v51, %s2501_s30  ;;  %1625 = vrot.lane.b32.xlu0 %v1620_v52, %s2500_s27 }
 0x4c4   :  { %v3203_v1 = vpop.permute.xlu0 %1543 }
 0x4c5   :  { %v1551_v46 = vmul.f32 0.0, %v3203_v1 }
 0x4c6   :  { %1389 = vrot.lane.b32.xlu1 %v1386_v22, %s2502_s18  ;;  %1348 = vrot.lane.b32.xlu0 %v1343_v62, %s2501_s30 }
 0x4c7   :  { %v2307_v11 = vpack.i.bf16 %v1551_v46, %v1235_v44 }
 0x4c8   :  { %v3213_v50 = vpop.permute.xlu0 %1582 }
 0x4c9   :  { %v1590_v13 = vmul.f32 0.0, %v3213_v50 }
 0x4ca   :  { %1666 = vrot.lane.b32.xlu1 %v1663_v56, %s2501_s30  ;;  %1387 = vrot.lane.b32.xlu0 %v1382_v20, %s2502_s18  ;;  %v1508_v20 = vsel %vm271_vm1, %v3162_v31, %v1507_v63  ;;  %v1270_v31 = vsel %vm355_vm2, %v3187_v55, %v1269_v15 }
 0x4cb   :  { %v2312_v8 = vpack.i.bf16 %v1590_v13, %v1274_v32 }
 0x4ce   :  { %1705 = vrot.lane.b32.xlu1 %v1702_v2, %s2502_s18  ;;  %1664 = vrot.lane.b32.xlu0 %v1659_v29, %s2501_s30 }
 0x4d2   :  { %1428 = vrot.lane.b32.xlu1 %v1425_v57, %s2503_s2  ;;  %1703 = vrot.lane.b32.xlu0 %v1698_v58, %s2502_s18 }
 0x4d6   :  { %1426 = vrot.lane.b32.xlu0 %v1421_v35, %s2503_s2  ;;  %1744 = vrot.lane.b32.xlu1 %v1741_v4, %s2503_s2 }
 0x4da   :  { %1742 = vrot.lane.b32.xlu0 %v1737_v9, %s2503_s2  ;;  %2303 = vrot.lane.b32.xlu1 %v2302_v54, %s2502_s18  ;;  %v1586_v9 = vsel %vm355_vm2, %v3213_v50, %v1585_v30 }
 0x4de   :  { %2298 = vrot.lane.b32.xlu0 %v2297_v3, %s2503_s2  ;;  %2313 = vrot.lane.b32.xlu1 %v2312_v8, %s2500_s27 }
 0x4e2   :  { %2308 = vrot.lane.b32.xlu0 %v2307_v11, %s2501_s30 }
 0x535   :  { %v1071_v7 = vpop.permute.xlu1 %1070 }
 0x536   :  { %v1073_v26 = vmul.f32 %v1071_v7, %v3081_v27  ;;  %v1074_v42 = vmul.f32 %v1071_v7, %v3083_v36  ;;  %v1192_v27 = vsel %vm271_vm1, %v3142_v5, %v1191_v40 }
 0x538   :  { %v3237_v49 = vadd.f32 %v1079_v12, %v1073_v26  ;;  %v3239_v43 = vadd.f32 %v1079_v12, %v1074_v42 }
 0x539   :  { %v3241_v61 = vpop.permute.xlu1 %1311  ;;  %v1118_v21 = vpop.permute.xlu0 %1117 }
 0x53a   :  { %v1083_v60 = vmax.f32 %v3237_v49, 0.0  ;;  %v1084_v45 = vmax.f32 %v3239_v43, 0.0  ;;  %v1120_v48 = vmul.f32 %v1118_v21, %v3089_v0  ;;  %v1121_v17 = vmul.f32 %v1118_v21, %v3091_v16 }
 0x53c   :  { %v3252_v36 = vsel %vm76_vm0, %v1083_v60, 0.0  ;;  %v3257_v51 = vsel %vm76_vm0, %v1084_v45, 0.0  ;;  %v3259_v52 = vadd.f32 %v1126_v14, %v1120_v48  ;;  %v3261_v41 = vadd.f32 %v1126_v14, %v1121_v17 }
 0x53d   :  { %v1628_v0 = vpop.permute.xlu1 %1627  ;;  %v3263_v22 = vpop.permute.xlu0 %1309  ;;  %v1197_v16 = vmul.f32 %v1192_v27, %v3252_v36  ;;  %v1198_v5 = vmul.f32 %v1191_v40, %v3257_v51  ;;  %v1275_v35 = vmul.f32 %v1270_v31, %v3252_v36  ;;  %v1276_v4 = vmul.f32 %v1269_v15, %v3257_v51 }
 0x53e   :  { %v1130_v62 = vmax.f32 %v3259_v52, 0.0  ;;  %v1131_v53 = vmax.f32 %v3261_v41, 0.0  ;;  %v1635_v11 = vmul.f32 0.0, %v1628_v0  ;;  %v1153_v40 = vsel %vm229_vm3, %v3137_v25, %v3227_v19 }
 0x53f   :  { %v2322_v56 = vpack.i.bf16 %v1198_v5, %v1197_v16  ;;  %v2342_v10 = vpack.i.bf16 %v1276_v4, %v1275_v35  ;;  %v1158_v42 = vmul.f32 %v1153_v40, %v3252_v36  ;;  %v1159_v21 = vmul.f32 %v3227_v19, %v3257_v51 }
 0x540   :  { %v3274_v24 = vsel %vm76_vm0, %v1130_v62, 0.0  ;;  %v3279_v2 = vsel %vm76_vm0, %v1131_v53, 0.0  ;;  %v1469_v25 = vsel %vm229_vm3, %v3154_v33, %v3229_v18 }
 0x541   :  { %v1351_v29 = vpop.permute.xlu1 %1350  ;;  %2323 = vrot.lane.b32.xlu1 %v2322_v56, %s2502_s18  ;;  %v3282_v34 = vpop.permute.xlu0 %1625  ;;  %v1513_v57 = vmul.f32 %v1508_v20, %v3274_v24  ;;  %v1514_v58 = vmul.f32 %v1507_v63, %v3279_v2  ;;  %v1591_v37 = vmul.f32 %v1586_v9, %v3274_v24  ;;  %v1592_v54 = vmul.f32 %v1585_v30, %v3279_v2 }
 0x542   :  { %v1629_v55 = vsel %vm372_vm4, %v3282_v34, %v1628_v0  ;;  %v1358_v30 = vmul.f32 0.0, %v1351_v29  ;;  %v2317_v0 = vpack.i.bf16 %v1159_v21, %v1158_v42  ;;  %v1474_v16 = vmul.f32 %v1469_v25, %v3274_v24 }
 0x543   :  { %v2332_v59 = vpack.i.bf16 %v1514_v58, %v1513_v57  ;;  %v1634_v3 = vmul.f32 %v1629_v55, %v3279_v2  ;;  %v2352_v44 = vpack.i.bf16 %v1592_v54, %v1591_v37  ;;  %v1475_v5 = vmul.f32 %v3229_v18, %v3279_v2 }
 0x544   :  { %v1237_v18 = vmul.f32 %v3231_v23, %v3257_v51 }
 0x545   :  { %v3290_v6 = vpop.permute.xlu1 %1389  ;;  %v1349_v28 = vpop.permute.xlu0 %1348  ;;  %2333 = vrot.lane.b32.xlu1 %v2332_v59, %s2502_s18  ;;  %v2362_v12 = vpack.i.bf16 %v1635_v11, %v1634_v3  ;;  %v2327_v57 = vpack.i.bf16 %v1475_v5, %v1474_v16  ;;  %v1547_v59 = vsel %vm313_vm6, %v3203_v1, %v3233_v38 }
 0x546   :  { %v1352_v46 = vsel %vm330_vm5, %v1349_v28, %v1351_v29  ;;  %v1231_v29 = vsel %vm313_vm6, %v3178_v39, %v3231_v23  ;;  %v1356_v33 = vmul.f32 %v1349_v28, %v3252_v36  ;;  %v1552_v9 = vmul.f32 %v1547_v59, %v3274_v24 }
 0x547   :  { %v1357_v14 = vmul.f32 %v1352_v46, %v3257_v51  ;;  %v1236_v58 = vmul.f32 %v1231_v29, %v3252_v36  ;;  %v1313_v23 = vsel %vm372_vm4, %v3263_v22, %v3241_v61 }
 0x548   :  { %v1318_v54 = vmul.f32 %v1313_v23, %v3257_v51 }
 0x549   :  { %v1667_v32 = vpop.permute.xlu1 %1666  ;;  %v3299_v13 = vpop.permute.xlu0 %1387  ;;  %2343 = vrot.lane.b32.xlu1 %v2342_v10, %s2500_s27  ;;  %v2372_v48 = vpack.i.bf16 %v1358_v30, %v1357_v14  ;;  %v2337_v28 = vpack.i.bf16 %v1237_v18, %v1236_v58  ;;  %v1553_v10 = vmul.f32 %v3233_v38, %v3279_v2  ;;  %v1397_v14 = vmul.f32 0.0, %v3290_v6 }
 0x54a   :  { %v1674_v27 = vmul.f32 0.0, %v1667_v32  ;;  %v1391_v46 = vsel %vm288_vm7, %v3299_v13, %v3290_v6 }
 0x54b   :  { %v2347_v55 = vpack.i.bf16 %v1553_v10, %v1552_v9 }
 0x54d   :  { %v3304_v8 = vpop.permute.xlu1 %1705  ;;  %v1665_v50 = vpop.permute.xlu0 %1664  ;;  %2353 = vrot.lane.b32.xlu1 %v2352_v44, %s2500_s27  ;;  %v1633_v44 = vmul.f32 %v3282_v34, %v3274_v24 }
 0x54e   :  { %v1668_v63 = vsel %vm330_vm5, %v1665_v50, %v1667_v32  ;;  %v1672_v19 = vmul.f32 %v1665_v50, %v3274_v24  ;;  %v1319_v32 = vmul.f32 0.0, %v3241_v61  ;;  %v1317_v50 = vmul.f32 %v3263_v22, %v3252_v36 }
 0x54f   :  { %v1673_v17 = vmul.f32 %v1668_v63, %v3279_v2  ;;  %v1713_v22 = vmul.f32 0.0, %v3304_v8 }
 0x550   :  { %v2392_v31 = vpack.i.bf16 %v1672_v19, %v1356_v33  ;;  %v2357_v38 = vpack.i.bf16 %v1319_v32, %v1318_v54  ;;  %v2367_v61 = vpack.i.bf16 %v1633_v44, %v1317_v50 }
 0x551   :  { %v1429_v15 = vpop.permute.xlu1 %1428  ;;  %2363 = vrot.lane.b32.xlu1 %v2362_v12, %s2499_s28  ;;  %v1704_v26 = vpop.permute.xlu0 %1703  ;;  %v2382_v56 = vpack.i.bf16 %v1674_v27, %v1673_v17  ;;  %v1396_v12 = vmul.f32 %v1391_v46, %v3257_v51 }
 0x552   :  { %v1436_v7 = vmul.f32 0.0, %v1429_v15  ;;  %v1707_v34 = vsel %vm288_vm7, %v1704_v26, %v3304_v8 }
 0x553   :  { %v2377_v40 = vpack.i.bf16 %v1397_v14, %v1396_v12  ;;  %v1712_v63 = vmul.f32 %v1707_v34, %v3279_v2 }
 0x554   :  { %1444 = vrot.lane.b32.xlu0 %v1436_v7, %s2495_s29 }
 0x555   :  { %2373 = vrot.lane.b32.xlu1 %v2372_v48, %s2498_s21  ;;  %v1427_v20 = vpop.permute.xlu0 %1426  ;;  %v1745_v39 = vpop.permute.xlu1 %1744  ;;  %v2387_v30 = vpack.i.bf16 %v1713_v22, %v1712_v63 }
 0x556   :  { %v1430_v35 = vsel %vm246_vm8, %v1427_v20, %v1429_v15  ;;  %v1434_v11 = vmul.f32 %v1427_v20, %v3252_v36  ;;  %v1711_v15 = vmul.f32 %v1704_v26, %v3274_v24  ;;  %v1752_v42 = vmul.f32 0.0, %v1745_v39 }
 0x557   :  { %v1435_v37 = vmul.f32 %v1430_v35, %v3257_v51  ;;  %v1395_v51 = vmul.f32 %v3299_v13, %v3252_v36 }
 0x558   :  { %2318 = vrot.lane.b32.xlu0 %v2317_v0, %s2503_s2 }
 0x559   :  { %2383 = vrot.lane.b32.xlu1 %v2382_v56, %s2498_s21  ;;  %v1743_v4 = vpop.permute.xlu0 %1742  ;;  %v2397_v7 = vpack.i.bf16 %v1711_v15, %v1395_v51  ;;  %v2304_v6 = vpop.permute.xlu1 %2303 }
 0x55a   :  { %v1746_v1 = vsel %vm246_vm8, %v1743_v4, %v1745_v39  ;;  %v2305_v16 = vunpack.i.l.bf16 %v2304_v6 }
 0x55b   :  { %v1751_v3 = vmul.f32 %v1746_v1, %v3279_v2  ;;  %v1750_v2 = vmul.f32 %v1743_v4, %v3274_v24 }
 0x55c   :  { %2328 = vrot.lane.b32.xlu0 %v2327_v57, %s2503_s2 }
 0x55d   :  { %2393 = vrot.lane.b32.xlu1 %v2392_v31, %s2498_s21  ;;  %v3382_v8 = vpop.permute.xlu1 %2313  ;;  %v2299_v48 = vpop.permute.xlu0 %2298 }
 0x55e   :  { %v2300_v24 = vunpack.i.l.bf16 %v2299_v48  ;;  %v2301_v4 = vunpack.i.h.bf16 %v2299_v48 }
 0x560   :  { %2338 = vrot.lane.b32.xlu0 %v2337_v28, %s2501_s30  ;;  %v2306_v28 = vunpack.i.h.bf16 %v2304_v6 }
 0x561   :  { %1442 = vrot.lane.b32.xlu1 %v1435_v37, %s2495_s29  ;;  %v3384_v36 = vpop.permute.xlu0 %2308 }
 0x564   :  { %2348 = vrot.lane.b32.xlu0 %v2347_v55, %s2501_s30 }
 0x565   :  { %1758 = vrot.lane.b32.xlu1 %v1751_v3, %s2495_s29  ;;  %v2315_v3 = vunpack.i.l.bf16 %v3382_v8 }
 0x568   :  { %2358 = vrot.lane.b32.xlu0 %v2357_v38, %s2499_s28 }
 0x569   :  { %1440 = vrot.lane.b32.xlu1 %v1434_v11, %s2495_s29  ;;  %v2310_v11 = vunpack.i.l.bf16 %v3384_v36 }
 0x56c   :  { %2368 = vrot.lane.b32.xlu0 %v2367_v61, %s2499_s28 }
 0x570   :  { %2378 = vrot.lane.b32.xlu0 %v2377_v40, %s2497_s16 }
 0x574   :  { %2388 = vrot.lane.b32.xlu0 %v2387_v30, %s2497_s16 }
 0x578   :  { %2398 = vrot.lane.b32.xlu0 %v2397_v7, %s2497_s16  ;;  %v2316_v7 = vunpack.i.h.bf16 %v3382_v8 }
 0x57c   :  { %1760 = vrot.lane.b32.xlu0 %v1752_v42, %s2495_s29 }
 0x580   :  { %1756 = vrot.lane.b32.xlu0 %v1750_v2, %s2495_s29 }
 0x5b3   :  { %v2324_v26 = vpop.permute.xlu1 %2323 }
 0x5b4   :  { %v2326_v27 = vunpack.i.h.bf16 %v2324_v26  ;;  %v2325_v0 = vunpack.i.l.bf16 %v2324_v26  ;;  %v2311_v26 = vunpack.i.h.bf16 %v3384_v36 }
 0x5b6   :  { %v1208_v20 = vsel %vm288_vm7, %v2305_v16, %v2325_v0  ;;  %v1209_v33 = vsel %vm288_vm7, %v2325_v0, %v2326_v27 }
 0x5b7   :  { %v2334_v21 = vpop.permute.xlu1 %2333 }
 0x5b8   :  { %v2336_v57 = vunpack.i.h.bf16 %v2334_v21  ;;  %v2335_v58 = vunpack.i.l.bf16 %v2334_v21 }
 0x5ba   :  { %v1524_v1 = vsel %vm288_vm7, %v2306_v28, %v2335_v58  ;;  %v1525_v32 = vsel %vm288_vm7, %v2335_v58, %v2336_v57 }
 0x5bb   :  { %v2344_v17 = vpop.permute.xlu1 %2343 }
 0x5bc   :  { %v2346_v23 = vunpack.i.h.bf16 %v2344_v17  ;;  %v2345_v37 = vunpack.i.l.bf16 %v2344_v17 }
 0x5be   :  { %v1286_v34 = vsel %vm372_vm4, %v2315_v3, %v2345_v37  ;;  %v1287_v63 = vsel %vm372_vm4, %v2345_v37, %v2346_v23 }
 0x5bf   :  { %v3386_v13 = vpop.permute.xlu1 %2353 }
 0x5c0   :  { %v2356_v14 = vunpack.i.h.bf16 %v3386_v13  ;;  %v2355_v40 = vunpack.i.l.bf16 %v3386_v13 }
 0x5c2   :  { %v1602_v17 = vsel %vm372_vm4, %v2316_v7, %v2355_v40  ;;  %v1603_v8 = vsel %vm372_vm4, %v2355_v40, %v2356_v14  ;;  %v1768_v7 = vld [vmem:[%s3504_s8] sm:$0xf] }
 0x5c3   :  { %v3391_v29 = vpop.permute.xlu1 %2363 }
 0x5c4   :  { %v2366_v22 = vunpack.i.h.bf16 %v3391_v29  ;;  %v2365_v15 = vunpack.i.l.bf16 %v3391_v29 }
 0x5c6   :  { %v3388_v25 = vpop.permute.xlu0 %1444  ;;  %v1646_v27 = vsel %vm355_vm2, %v2365_v15, %v2366_v22 }
 0x5c7   :  { %v3401_v38 = vpop.permute.xlu1 %2373 }
 0x5c8   :  { %v2376_v41 = vunpack.i.h.bf16 %v3401_v38 }
 0x5ca   :  { %v2319_v5 = vpop.permute.xlu0 %2318 }
 0x5cb   :  { %v2321_v19 = vunpack.i.h.bf16 %v2319_v5  ;;  %v2320_v56 = vunpack.i.l.bf16 %v2319_v5  ;;  %v2384_v13 = vpop.permute.xlu1 %2383 }
 0x5cc   :  { %v2385_v23 = vunpack.i.l.bf16 %v2384_v13 }
 0x5cd   :  { %v1169_v18 = vsel %vm246_vm8, %v2300_v24, %v2320_v56  ;;  %v1170_v31 = vsel %vm246_vm8, %v2320_v56, %v2321_v19 }
 0x5ce   :  { %v2139_v59 = vpack.c.bf16 %v1208_v20, %v1169_v18  ;;  %v2329_v35 = vpop.permute.xlu0 %2328  ;;  %v2137_v39 = vpack.c.bf16 %v1209_v33, %v1170_v31  ;;  %v2163_v20 = vpack.c.bf16 %v1646_v27, %v1131_v53  ;;  %v2375_v53 = vunpack.i.l.bf16 %v3401_v38 }
 0x5cf   :  { %v2331_v9 = vunpack.i.h.bf16 %v2329_v35  ;;  %v2330_v10 = vunpack.i.l.bf16 %v2329_v35  ;;  %v2394_v33 = vpop.permute.xlu1 %2393 }
 0x5d0   :  { %2138 = vmatprep.subr.bf16.mxu0 %v2137_v39  ;;  %v1369_v37 = vsel %vm313_vm6, %v2375_v53, %v2376_v41 }
 0x5d1   :  { %v1485_v54 = vsel %vm246_vm8, %v2301_v4, %v2330_v10  ;;  %2140 = vmatpush1.bf16.msra.mxu0 %v2139_v59  ;;  %v1486_v55 = vsel %vm246_vm8, %v2330_v10, %v2331_v9  ;;  %v2386_v10 = vunpack.i.h.bf16 %v2384_v13 }
 0x5d2   :  { %v2157_v44 = vpack.c.bf16 %v1524_v1, %v1485_v54  ;;  %v2339_v46 = vpop.permute.xlu0 %2338  ;;  %v2155_v50 = vpack.c.bf16 %v1525_v32, %v1486_v55  ;;  %v2396_v54 = vunpack.i.h.bf16 %v2394_v33  ;;  %v2395_v55 = vunpack.i.l.bf16 %v2394_v33 }
 0x5d3   :  { %v2341_v61 = vunpack.i.h.bf16 %v2339_v46  ;;  %v2340_v12 = vunpack.i.l.bf16 %v2339_v46  ;;  %v1443_v9 = vpop.permute.xlu1 %1442  ;;  %v1685_v32 = vsel %vm313_vm6, %v2385_v23, %v2386_v10 }
 0x5d4   :  { %2156 = vmatprep.subr.bf16.mxu1 %v2155_v50 }
 0x5d5   :  { %v1247_v30 = vsel %vm330_vm5, %v2310_v11, %v2340_v12  ;;  %2158 = vmatpush1.bf16.msra.mxu1 %v2157_v44  ;;  %v1248_v51 = vsel %vm330_vm5, %v2340_v12, %v2341_v61  ;;  %v1368_v11 = vsel %vm313_vm6, %v2395_v55, %v2375_v53  ;;  %v1684_v61 = vsel %vm313_vm6, %v2396_v54, %v2385_v23  ;;  %v1983_v23 = vld [vmem:[%s3507_s11] sm:$0xf] }
 0x5d6   :  { %v2143_v42 = vpack.c.bf16 %v1286_v34, %v1247_v30  ;;  %v2349_v2 = vpop.permute.xlu0 %2348  ;;  %v2141_v6 = vpack.c.bf16 %v1287_v63, %v1248_v51  ;;  %v1447_v30 = vsel %vm229_vm3, %v1443_v9, %v3388_v25  ;;  %v1950_v25 = vld [vmem:[%s3505_s9] sm:$0xff] }
 0x5d7   :  { %v2351_v21 = vunpack.i.h.bf16 %v2349_v2  ;;  %v2350_v48 = vunpack.i.l.bf16 %v2349_v2  ;;  %v1759_v38 = vpop.permute.xlu1 %1758  ;;  %v1974_v54 = vld [vmem:[%s3506_s10] sm:$0xf] }
 0x5d8   :  { %2142 = vmatprep.subr.bf16.mxu0 %v2141_v6  ;;  %v1952_v6 = vcombine.high %v1950_v25, %v1950_v25  ;;  %v2020_v55 = vld [vmem:[%s3506_s10] sm:$0xf]  ;;  %s2506_s10 = smov [#allocation9]  }
 0x5d9   :  { %v1563_v0 = vsel %vm330_vm5, %v2311_v26, %v2350_v48  ;;  %2144 = vmatpush1.bf16.msra.mxu0 %v2143_v42  ;;  %v1564_v16 = vsel %vm330_vm5, %v2350_v48, %v2351_v21  ;;  %s2048_s0 = sshll.u32 %s2506_s10, 4  ;;  %s2049_s0 = int_to_ptr.vmem [resolvable:$true] %s2048_s0 }
 0x5da   :  { %v2161_v5 = vpack.c.bf16 %v1602_v17, %v1563_v0  ;;  %v2359_v24 = vpop.permute.xlu0 %2358  ;;  %v2159_v19 = vpack.c.bf16 %v1603_v8, %v1564_v16  ;;  %p2467_p3 = scmp.lt.s32.totalorder %s2049_s0, %s2049_s0 }
 0x5db   :  { %v2361_v56 = vunpack.i.h.bf16 %v2359_v24  ;;  %v2360_v36 = vunpack.i.l.bf16 %v2359_v24 }
 0x5dc   :  { %2160 = vmatprep.subr.bf16.mxu1 %v2159_v19 }
 0x5dd   :  { %v1330_v29 = vsel %vm355_vm2, %v2360_v36, %v2361_v56  ;;  %2162 = vmatpush1.bf16.msra.mxu1 %v2161_v5 }
 0x5de   :  { %v2145_v57 = vpack.c.bf16 %v1330_v29, %v1084_v45  ;;  %v2369_v58 = vpop.permute.xlu0 %2368  ;;  %2165 = vmatprep.subr.msk.bf16.mxu1 %vm3008_vm10, %v2163_v20 }
 0x5df   :  { %v2371_v18 = vunpack.i.h.bf16 %v2369_v58  ;;  %v2370_v31 = vunpack.i.l.bf16 %v2369_v58 }
 0x5e0   :  { %2147 = vmatprep.subr.msk.bf16.mxu0 %vm3008_vm10, %v2145_v57 }
 0x5e1   :  { %v1645_v59 = vsel %vm355_vm2, %v2371_v18, %v2365_v15  ;;  %v1329_v35 = vsel %vm355_vm2, %v2370_v31, %v2360_v36  ;;  %v1441_v15 = vpop.permute.xlu1 %1440 }
 0x5e2   :  { %v2166_v43 = vpack.c.bf16 %v1645_v59, %v1130_v62  ;;  %v2148_v45 = vpack.c.bf16 %v1329_v35, %v1083_v60  ;;  %v2379_v39 = vpop.permute.xlu0 %2378  ;;  %v1446_v42 = vsel %vm229_vm3, %v1441_v15, %v1443_v9 }
 0x5e3   :  { %v2381_v4 = vunpack.i.h.bf16 %v2379_v39  ;;  %v2380_v28 = vunpack.i.l.bf16 %v2379_v39 }
 0x5e4   :  { %2150 = vmatpush1.bf16.msk.msra.mxu0 %vm3008_vm10, %v2148_v45  ;;  %2168 = vmatpush1.bf16.msk.msra.mxu1 %vm3008_vm10, %v2166_v43 }
 0x5e5   :  { %v1408_v52 = vsel %vm271_vm1, %v2380_v28, %v2381_v4 }
 0x5e6   :  { %v2389_v62 = vpop.permute.xlu0 %2388  ;;  %v2151_v1 = vpack.c.bf16 %v1408_v52, %v1369_v37 }
 0x5e7   :  { %v2391_v49 = vunpack.i.h.bf16 %v2389_v62  ;;  %v2390_v60 = vunpack.i.l.bf16 %v2389_v62 }
 0x5e8   :  { %2152 = vmatprep.subr.bf16.mxu0 %v2151_v1 }
 0x5e9   :  { %v1724_v3 = vsel %vm271_vm1, %v2390_v60, %v2391_v49 }
 0x5ea   :  { %v2399_v47 = vpop.permute.xlu0 %2398  ;;  %v2169_v44 = vpack.c.bf16 %v1724_v3, %v1685_v32 }
 0x5eb   :  { %v2401_v46 = vunpack.i.h.bf16 %v2399_v47  ;;  %v2400_v50 = vunpack.i.l.bf16 %v2399_v47 }
 0x5ec   :  { %2170 = vmatprep.subr.bf16.mxu1 %v2169_v44  ;;  %v2029_v44 = vld [vmem:[%s3507_s11] sm:$0xf]  ;;  %s2462_s11 = scalar_lea.vmem %s2049_s0, 256 }
 0x5ed   :  { %v1407_v12 = vsel %vm271_vm1, %v2400_v50, %v2380_v28  ;;  %v1723_v34 = vsel %vm271_vm1, %v2401_v46, %v2390_v60  ;;  %p2463_p2 = scmp.ne.s32.totalorder %s2049_s0, %s2462_s11  ;;  %p2468_p4 = scmp.lt.s32.totalorder %s2462_s11, %s2462_s11 }
 0x5ee   :  { %v2153_v14 = vpack.c.bf16 %v1407_v12, %v1368_v11  ;;  %v2171_v40 = vpack.c.bf16 %v1723_v34, %v1684_v61  ;;  %v1761_v63 = vpop.permute.xlu0 %1760 }
 0x5ef   :  { %v1763_v22 = vsel %vm229_vm3, %v1759_v38, %v1761_v63  ;;  %p2469_p5 = por %p2468_p4, %p2467_p3 }
 0x5f0   :  { %2154 = vmatpush1.bf16.msra.mxu0 %v2153_v14  ;;  %2172 = vmatpush1.bf16.msra.mxu1 %v2171_v40 }
 0x5f1   :  { %1824 = vmatprep.subr.mxu0 %v1447_v30  ;;  %1895 = vmatprep.subr.mxu1 %v1763_v22  ;;  %p2470_p6 = pnand %p2469_p5, %p2463_p2 }
 0x5f2   :  { %v1757_v51 = vpop.permute.xlu0 %1756 }
 0x5f3   :  { %v1762_v2 = vsel %vm229_vm3, %v1757_v51, %v1759_v38 }
 0x5f4   :  { %1825 = vmatpush1.msra.mxu0 %v1446_v42  ;;  %1896 = vmatpush1.msra.mxu1 %v1762_v2 }
 0x5f5   :  { %2091 = vmatmul.mubr.msk.f32.vlgmr.msra.gmra.mrb[2].mxu0 %vm896_vm11, %v1768_v7  ;;  %2092 = vmatmul.mubr.msk.f32.vlgmr.msra.gmra.mrb[2].mxu1 %vm896_vm11, %v1768_v7 }
 0x6c8   :  { %v1874_v26 = vpop.f32.mrb[2].mxu0  ;;  %v1945_v21 = vpop.f32.mrb[2].mxu1 }
 0x6c9   :  { %v1954_v48 = vadd.f32 %v1950_v25, %v1874_v26  ;;  %v2000_v17 = vadd.f32 %v1950_v25, %v1945_v21  ;;  %v1876_v13 = vpop.f32.mrb[3].mxu0  ;;  %v1947_v27 = vpop.f32.mrb[3].mxu1 }
 0x6ca   :  { %v1955_v0 = vadd.f32 %v1952_v6, %v1876_v13  ;;  %v2001_v16 = vadd.f32 %v1952_v6, %v1947_v27 }
 0x6cb   :  { %v1956_v8 = vsel %vm76_vm0, %v1954_v48, 0.0  ;;  %v2002_v5 = vsel %vm76_vm0, %v2000_v17, 0.0 }
 0x6cc   :  { %v1957_v24 = vsel %vm76_vm0, %v1955_v0, 0.0  ;;  %v2003_v19 = vsel %vm76_vm0, %v2001_v16, 0.0 }
 0x6cd   :  { %v1958_v56 = vadd.f32 %v1957_v24, %v1956_v8  ;;  %v2004_v36 = vadd.f32 %v2003_v19, %v2002_v5 }
 0x6cf   :  { %2005 = vadd.xlane.f32.xlu0 %v2004_v36  ;;  %1959 = vadd.xlane.f32.xlu1 %v1958_v56 }
 0x75c   :  { %v2006_v20 = vpop.xlane.xlu0 %2005  ;;  %v1960_v29 = vpop.xlane.xlu1 %1959 }
 0x75d   :  { %v2007_v33 = vmul.f32 0.00390625, %v2006_v20  ;;  %v1961_v57 = vmul.f32 0.00390625, %v1960_v29 }
 0x75f   :  { %v2008_v58 = vsub.f32 %v2000_v17, %v2007_v33  ;;  %v2009_v18 = vsub.f32 %v2001_v16, %v2007_v33  ;;  %v1962_v31 = vsub.f32 %v1954_v48, %v1961_v57  ;;  %v1963_v41 = vsub.f32 %v1955_v0, %v1961_v57 }
 0x761   :  { %v2010_v53 = vmul.f32 %v2008_v58, %v2008_v58  ;;  %v2011_v59 = vmul.f32 %v2009_v18, %v2009_v18  ;;  %v1964_v35 = vmul.f32 %v1962_v31, %v1962_v31  ;;  %v1965_v43 = vmul.f32 %v1963_v41, %v1963_v41 }
 0x763   :  { %v2012_v45 = vsel %vm76_vm0, %v2010_v53, 0.0  ;;  %v2013_v39 = vsel %vm76_vm0, %v2011_v59, 0.0  ;;  %v1966_v4 = vsel %vm76_vm0, %v1964_v35, 0.0  ;;  %v1967_v28 = vsel %vm76_vm0, %v1965_v43, 0.0 }
 0x764   :  { %v2014_v9 = vadd.f32 %v2013_v39, %v2012_v45  ;;  %v1968_v10 = vadd.f32 %v1967_v28, %v1966_v4 }
 0x766   :  { %2015 = vadd.xlane.f32.xlu1 %v2014_v9  ;;  %1969 = vadd.xlane.f32.xlu0 %v1968_v10 }
 0x777   :  { %1986 = vperm.xlu1 %2190, %v1983_v23  }
 0x7f3   :  { %v1970_v37 = vpop.xlane.xlu0 %1969  ;;  %v2016_v52 = vpop.xlane.xlu1 %2015 }
 0x7f4   :  { %v1971_v62 = vmul.f32 0.00390625, %v1970_v37  ;;  %v2017_v1 = vmul.f32 0.00390625, %v2016_v52 }
 0x7f6   :  { %v1972_v49 = vadd.f32 1e-05, %v1971_v62  ;;  %v2018_v60 = vadd.f32 1e-05, %v2017_v1 }
 0x7f7   :  { %v1987_v46 = vpop.permute.xlu1 %1986 }
 0x7f8   :  { %2414 = vrsqrt.f32 %v1972_v49 }
 0x7f9   :  { %2416 = vrsqrt.f32 %v2018_v60 }
 0x802   :  { %v2415_v32 = vpop.eup %2414 }
 0x803   :  { %v2417_v3 = vpop.eup %2416  ;;  %v1975_v38 = vmul.f32 %v2415_v32, %v1974_v54 }
 0x804   :  { %v2021_v47 = vmul.f32 %v2417_v3, %v2020_v55 }
 0x805   :  { %1978 = vperm.xlu0 %2191, %v1975_v38  }
 0x806   :  { %2024 = vperm.xlu1 %2190, %v2021_v47  }
 0x809   :  { %2032 = vperm.xlu0 %2191, %v2029_v44  }
 0x884   :  { %v1979_v50 = vpop.permute.xlu0 %1978 }
 0x885   :  { %v1981_v11 = vmul.f32 %v1979_v50, %v1962_v31  ;;  %v1982_v61 = vmul.f32 %v1979_v50, %v1963_v41  ;;  %v2025_v12 = vpop.permute.xlu1 %2024 }
 0x886   :  { %v2027_v40 = vmul.f32 %v2025_v12, %v2008_v58  ;;  %v2028_v63 = vmul.f32 %v2025_v12, %v2009_v18 }
 0x887   :  { %v1989_v34 = vadd.f32 %v1987_v46, %v1981_v11  ;;  %v1990_v14 = vadd.f32 %v1987_v46, %v1982_v61 }
 0x888   :  { %v2033_v22 = vpop.permute.xlu0 %2032 }
 0x889   :  { %v2035_v15 = vadd.f32 %v2033_v22, %v2027_v40  ;;  %v2036_v30 = vadd.f32 %v2033_v22, %v2028_v63  ;;  %v1993_v51 = vcombine.low %v1989_v34, %v1990_v14 }
 0x88b   :  { %v2039_v7 = vcombine.low %v2035_v15, %v2036_v30  ;;  %1995 = vst [vmem:[#allocation9] sm:$0xff] %v1993_v51 }
 0x88d   :  { %2042 = vst [vmem:[#allocation9 + $0x8] sm:$0xff] %v2039_v7 }
 0x88e   :  { %2473 = shalt.err (!%p2470_p6)
}
 0x88f   :  { %s2474_s6 = scalar_lea.hbm %s3508_s12, 256 }
 0x890   :  { %p2475_p7 = scmp.ne.s32.totalorder %s3508_s12, %s2474_s6  ;;  %p2478_p8 = scmp.lt.u32.totalorder %s2474_s6, %s3508_s12 }
 0x892   :  { %p2480_p9 = pnand %p2478_p8, %p2475_p7 }
 0x894   :  { %2483 = shalt.err (!%p2480_p9)
}
 0x895   :  { %2054 = dma.vmem_to_hbm [thread:$0]  %s2049_s0, 256, %s3508_s12, [#allocation6], %s2491_s13, %s2491_s13, %s2492_s14  }
 0x896   :  { %2488 = dma.done.wait [#allocation6], 256  }
 0x897   :  { %2489 = vsyncadd [#allocation6], 4294967040 }
 0x898   :  { %2058 = vsyncpa [#allocation5], 1 }
 0x899   :  { %2059 = vsyncpa [#allocation8], 1 }
 0x89a   :  { %2060 = vsyncpa [#allocation6], 1 }

</bundles_post_ra>
